<compile_context>
chip_gen: v5e
topology: v5e:2x2
jax: 0.10.0
libtpu: 0.0.40
codegen_flags: <defaults>
</compile_context>

<pallas_src>
import functools

import jax
import jax.numpy as jnp
from jax import lax
from jax.experimental import pallas as pl
from jax.experimental.pallas import tpu as pltpu

_LANE = 128
_UNROLL_MAX = 64          # fully unroll the recurrence up to this many steps


def _round_up(n, m):
    return ((n + m - 1) // m) * m


def _lstm_fc_kernel(Hp, seq_len, unroll,
                    x_ref, wih_ref, whh_ref, b_ref, wfc_ref, bfc_ref,
                    h0_ref, c0_ref,
                    y_ref, hn_ref, cn_ref,
                    xw_ref, hseq_ref):
    # Input projection for every timestep at once on the MXU (off the serial chain),
    # parked in VMEM scratch so no (S,4Hp) value stays live across the recurrence.
    xw_ref[...] = jnp.dot(x_ref[...], wih_ref[...],
                          preferred_element_type=jnp.float32) + b_ref[...]

    def step(t, h, c):
        # Recurrent matvec: Whh is streamed from VMEM each step (idle vld slot)
        # rather than hoisted into a 128-256 KiB value that eats the vreg file.
        # Dot operands may be bf16 (wrapper choice); accumulation is always f32.
        gates = xw_ref[pl.ds(t, 1), :] + jnp.dot(
            h.astype(whh_ref.dtype), whh_ref[...],
            preferred_element_type=jnp.float32)
        # Gate layout is (i, f, o, g): one tanh-form sigmoid covers the contiguous
        # 3*Hp (i|f|o) block, one tanh covers g -> 2 EUP ops on the serial chain.
        sig = 0.5 * jnp.tanh(0.5 * gates[:, 0:3 * Hp]) + 0.5
        i_g = sig[:, 0 * Hp:1 * Hp]
        f_g = sig[:, 1 * Hp:2 * Hp]
        o_g = sig[:, 2 * Hp:3 * Hp]
        g_g = jnp.tanh(gates[:, 3 * Hp:4 * Hp])
        c = f_g * c + i_g * g_g
        h = o_g * jnp.tanh(c)
        # Per-step h row goes straight to VMEM scratch (idle vst slot); no concat.
        hseq_ref[pl.ds(t, 1), :] = h
        return h, c

    h = h0_ref[...]             # (1, Hp) f32
    c = c0_ref[...]             # (1, Hp) f32
    if unroll:
        # seq_len is a static Python int: static slices, whole chain visible to LLO.
        for t in range(seq_len):
            h, c = step(t, h, c)
    else:
        # Large-chunk_size path: bounded vreg/VMEM pressure and compile time.
        h, c = lax.fori_loop(0, seq_len,
                             lambda t, carry: step(t, *carry), (h, c))

    # Final Linear over the whole hidden sequence: (S,Hp)@(Hp,Op)+(1,Op).
    # Op is a multiple of 128 so the output store is lane-dense (unmasked vst).
    y_ref[...] = jnp.dot(hseq_ref[...], wfc_ref[...],
                         preferred_element_type=jnp.float32) + bfc_ref[...]
    hn_ref[...] = h
    cn_ref[...] = c


def _pad_gate_cols(w, H, Hp):
    """w: (rows, 4H) in PyTorch gate order (i,f,g,o) -> (rows, 4Hp) in kernel order
    (i,f,o,g), each gate block zero-padded to Hp lanes."""
    r = w.shape[0]
    w4 = w.reshape(r, 4, H)[:, (0, 1, 3, 2), :]          # reorder gates -> (i,f,o,g)
    return jnp.pad(w4, ((0, 0), (0, 0), (0, Hp - H))).reshape(r, 4 * Hp)


def generic_rnn_forward(x, params, state_0=None, *,
                        recurrent_dtype=jnp.bfloat16, unroll=None):
    """x: (chunk_size, in_dim) float32; params in PyTorch nn.LSTM / nn.Linear layout.
    Returns (y, (h_n, c_n)) matching GenericRNN(type='LSTM').forward (batch=1).

    recurrent_dtype: dtype of the recurrent matmul operands (bf16 default for speed;
    pass jnp.float32 for bit-accurate-to-reference math).  Gate math / state are f32.
    """
    w_ih, w_hh, b_ih, b_hh, w_fc, b_fc = params
    S, I = x.shape
    H = w_hh.shape[1]
    O = w_fc.shape[0]
    Hp = _round_up(H, _LANE)
    Op = _round_up(O, _LANE)
    if unroll is None:
        unroll = S <= _UNROLL_MAX

    # One-time layout plumbing (transpose + gate reorder + lane-pad) outside the kernel.
    wih_p = _pad_gate_cols(w_ih.T.astype(jnp.float32), H, Hp)                     # (I, 4Hp)
    whh_p = jnp.pad(_pad_gate_cols(w_hh.T.astype(jnp.float32), H, Hp),
                    ((0, Hp - H), (0, 0))).astype(recurrent_dtype)                # (Hp, 4Hp)
    b_p = _pad_gate_cols((b_ih + b_hh).astype(jnp.float32).reshape(1, 4 * H),
                         H, Hp)                                                   # (1, 4Hp)
    wfc_p = jnp.pad(w_fc.T.astype(jnp.float32), ((0, Hp - H), (0, Op - O)))       # (Hp, Op)
    bfc_p = jnp.pad(b_fc.astype(jnp.float32), (0, Op - O)).reshape(1, Op)         # (1, Op)

    if state_0 is None:
        h0 = jnp.zeros((1, Hp), jnp.float32)
        c0 = jnp.zeros((1, Hp), jnp.float32)
    else:
        h0 = jnp.pad(state_0[0].reshape(1, H).astype(jnp.float32), ((0, 0), (0, Hp - H)))
        c0 = jnp.pad(state_0[1].reshape(1, H).astype(jnp.float32), ((0, 0), (0, Hp - H)))

    kernel = functools.partial(_lstm_fc_kernel, Hp, S, bool(unroll))
    vmem = pl.BlockSpec(memory_space=pltpu.MemorySpace.VMEM)

    # Rough resident-VMEM estimate (no grid -> single-buffered); keep headroom but
    # stay within v7x's smaller physical VMEM.
    est_bytes = 4 * (S * (I + 4 * Hp + Hp + Op)          # x, xw scratch, hseq scratch, y
                     + I * 4 * Hp + Hp * 4 * Hp          # Wih, Whh
                     + Hp * Op + 4 * Hp + Op + 4 * Hp)   # Wfc, biases, states
    vmem_limit = int(min(100 * 2 ** 20, max(32 * 2 ** 20, 2 * est_bytes)))

    y_p, h_n, c_n = pl.pallas_call(
        kernel,
        out_shape=(
            jax.ShapeDtypeStruct((S, Op), jnp.float32),
            jax.ShapeDtypeStruct((1, Hp), jnp.float32),
            jax.ShapeDtypeStruct((1, Hp), jnp.float32),
        ),
        in_specs=[vmem] * 8,
        out_specs=(vmem, vmem, vmem),
        scratch_shapes=[
            pltpu.VMEM((S, 4 * Hp), jnp.float32),   # xw: precomputed input projection
            pltpu.VMEM((S, Hp), jnp.float32),       # hseq: per-step hidden rows
        ],
        compiler_params=pltpu.CompilerParams(vmem_limit_bytes=vmem_limit),
    )(x.astype(jnp.float32), wih_p, whh_p, b_p, wfc_p, bfc_p, h0, c0)

    y = y_p[:, :O]
    # PyTorch returns states with shape (num_layers*num_dirs, batch, hidden).
    return y, (h_n[:, :H].reshape(1, 1, H), c_n[:, :H].reshape(1, 1, H))


def init_params(key, in_dim, hidden_dim, out_dim):
    """Deterministic params in PyTorch nn.LSTM / nn.Linear layout & init ranges."""
    k = 1.0 / jnp.sqrt(hidden_dim)
    ks = jax.random.split(key, 6)
    w_ih = jax.random.uniform(ks[0], (4 * hidden_dim, in_dim), jnp.float32, -k, k)
    w_hh = jax.random.uniform(ks[1], (4 * hidden_dim, hidden_dim), jnp.float32, -k, k)
    b_ih = jax.random.uniform(ks[2], (4 * hidden_dim,), jnp.float32, -k, k)
    b_hh = jax.random.uniform(ks[3], (4 * hidden_dim,), jnp.float32, -k, k)
    w_fc = jax.random.uniform(ks[4], (out_dim, hidden_dim), jnp.float32, -k, k)
    b_fc = jax.random.uniform(ks[5], (out_dim,), jnp.float32, -k, k)
    return (w_ih, w_hh, b_ih, b_hh, w_fc, b_fc)


def _reference(x, params, state_0=None):
    """Pure-JAX reference of the same forward pass (PyTorch LSTM + Linear semantics)."""
    w_ih, w_hh, b_ih, b_hh, w_fc, b_fc = params
    H = w_hh.shape[1]
    if state_0 is None:
        h = jnp.zeros((1, H), jnp.float32)
        c = jnp.zeros((1, H), jnp.float32)
    else:
        h = state_0[0].reshape(1, H).astype(jnp.float32)
        c = state_0[1].reshape(1, H).astype(jnp.float32)
    hs = []
    for t in range(x.shape[0]):
        gates = x[t:t + 1] @ w_ih.T + h @ w_hh.T + (b_ih + b_hh).reshape(1, -1)
        i_g = jax.nn.sigmoid(gates[:, 0 * H:1 * H])
        f_g = jax.nn.sigmoid(gates[:, 1 * H:2 * H])
        g_g = jnp.tanh(gates[:, 2 * H:3 * H])
        o_g = jax.nn.sigmoid(gates[:, 3 * H:4 * H])
        c = f_g * c + i_g * g_g
        h = o_g * jnp.tanh(c)
        hs.append(h)
    hseq = jnp.concatenate(hs, axis=0)
    return hseq @ w_fc.T + b_fc.reshape(1, -1), h, c


if __name__ == "__main__":
    in_dim, hidden_dim, out_dim, seq = 8, 32, 16, 8

    key = jax.random.PRNGKey(0)
    k_x, k_p = jax.random.split(key)
    x = jax.random.normal(k_x, (seq, in_dim), jnp.float32)   # (chunk_size, in_dim)
    params = init_params(k_p, in_dim, hidden_dim, out_dim)

    y_ref, h_ref, c_ref = _reference(x, params)

    # 1) Exact-precision path (f32 recurrent matmul), fully unrolled recurrence.
    y, (h_n, c_n) = generic_rnn_forward(x, params, recurrent_dtype=jnp.float32)
    jax.block_until_ready((y, h_n, c_n))
    assert y.shape == (seq, out_dim)
    assert jnp.allclose(y, y_ref, atol=1e-5, rtol=1e-5)
    assert jnp.allclose(h_n.reshape(1, -1), h_ref, atol=1e-5, rtol=1e-5)
    assert jnp.allclose(c_n.reshape(1, -1), c_ref, atol=1e-5, rtol=1e-5)

    # 2) Exact-precision path through the lax.fori_loop (large-chunk_size) code path.
    y2, (h2, c2) = generic_rnn_forward(x, params, recurrent_dtype=jnp.float32,
                                       unroll=False)
    jax.block_until_ready((y2, h2, c2))
    assert jnp.allclose(y2, y_ref, atol=1e-5, rtol=1e-5)
    assert jnp.allclose(h2.reshape(1, -1), h_ref, atol=1e-5, rtol=1e-5)
    assert jnp.allclose(c2.reshape(1, -1), c_ref, atol=1e-5, rtol=1e-5)

    # 3) Default perf path: bf16 recurrent-matmul operands, f32 gate math / state.
    y3, (h3, c3) = generic_rnn_forward(x, params)
    jax.block_until_ready((y3, h3, c3))
    assert jnp.allclose(y3, y_ref, atol=3e-2, rtol=3e-2)
    assert jnp.allclose(h3.reshape(1, -1), h_ref, atol=3e-2, rtol=3e-2)
    assert jnp.allclose(c3.reshape(1, -1), c_ref, atol=3e-2, rtol=3e-2)

    print("KERNEL_OK")
</pallas_src>

<mosaic_0001>
module attributes {stable_mosaic.version = 11 : i64} {
  func.func @_lstm_fc_kernel(%arg0: memref<8x8xf32, #tpu.memory_space<vmem>>, %arg1: memref<8x512xf32, #tpu.memory_space<vmem>>, %arg2: memref<128x512xf32, #tpu.memory_space<vmem>>, %arg3: memref<1x512xf32, #tpu.memory_space<vmem>>, %arg4: memref<128x128xf32, #tpu.memory_space<vmem>>, %arg5: memref<1x128xf32, #tpu.memory_space<vmem>>, %arg6: memref<1x128xf32, #tpu.memory_space<vmem>>, %arg7: memref<1x128xf32, #tpu.memory_space<vmem>>, %arg8: memref<8x128xf32, #tpu.memory_space<vmem>>, %arg9: memref<1x128xf32, #tpu.memory_space<vmem>>, %arg10: memref<1x128xf32, #tpu.memory_space<vmem>>, %arg11: memref<8x512xf32, #tpu.memory_space<vmem>>, %arg12: memref<8x128xf32, #tpu.memory_space<vmem>>) attributes {dimension_semantics = [], scalar_prefetch = 0 : i64, scratch_operands = 2 : i64, tpu.core_type = #tpu.core_type<tc>} {
    %c0 = arith.constant 0 : index
    %c0_0 = arith.constant 0 : index
    %0 = vector.load %arg0[%c0, %c0_0] : memref<8x8xf32, #tpu.memory_space<vmem>>, vector<8x8xf32>
    %c0_1 = arith.constant 0 : index
    %c0_2 = arith.constant 0 : index
    %1 = vector.load %arg1[%c0_1, %c0_2] : memref<8x512xf32, #tpu.memory_space<vmem>>, vector<8x512xf32>
    %cst = arith.constant dense<0.000000e+00> : vector<8x512xf32>
    %2 = tpu.matmul %0, %1, %cst {dimension_numbers = #tpu.dot_dimension_numbers<[1], [0], [0], [1], [0, 0, 1, 1], [], []>} : vector<8x8xf32>, vector<8x512xf32>, vector<8x512xf32> -> vector<8x512xf32>
    %c0_3 = arith.constant 0 : index
    %c0_4 = arith.constant 0 : index
    %3 = vector.load %arg3[%c0_3, %c0_4] : memref<1x512xf32, #tpu.memory_space<vmem>>, vector<1x512xf32>
    %4 = vector.broadcast %3 : vector<1x512xf32> to vector<8x512xf32>
    %5 = arith.addf %2, %4 : vector<8x512xf32>
    %c0_5 = arith.constant 0 : index
    %c0_6 = arith.constant 0 : index
    %6 = vector.load %arg11[%c0_5, %c0_6] : memref<8x512xf32, #tpu.memory_space<vmem>>, vector<8x512xf32>
    tpu.vector_store %arg11[%c0_5, %c0_6], %5 {strides = array<i32>} : memref<8x512xf32, #tpu.memory_space<vmem>>, vector<8x512xf32>,
    %c0_7 = arith.constant 0 : index
    %c0_8 = arith.constant 0 : index
    %7 = vector.load %arg6[%c0_7, %c0_8] : memref<1x128xf32, #tpu.memory_space<vmem>>, vector<1x128xf32>
    %c0_9 = arith.constant 0 : index
    %c0_10 = arith.constant 0 : index
    %8 = vector.load %arg7[%c0_9, %c0_10] : memref<1x128xf32, #tpu.memory_space<vmem>>, vector<1x128xf32>
    %c0_11 = arith.constant 0 : index
    %c0_12 = arith.constant 0 : index
    %9 = vector.load %arg11[%c0_11, %c0_12] : memref<8x512xf32, #tpu.memory_space<vmem>>, vector<1x512xf32>
    %c0_13 = arith.constant 0 : index
    %c0_14 = arith.constant 0 : index
    %10 = vector.load %arg2[%c0_13, %c0_14] : memref<128x512xf32, #tpu.memory_space<vmem>>, vector<128x512xf32>
    %cst_15 = arith.constant dense<0.000000e+00> : vector<1x512xf32>
    %11 = tpu.matmul %7, %10, %cst_15 {dimension_numbers = #tpu.dot_dimension_numbers<[1], [0], [0], [1], [0, 0, 1, 1], [], []>} : vector<1x128xf32>, vector<128x512xf32>, vector<1x512xf32> -> vector<1x512xf32>
    %12 = arith.addf %9, %11 : vector<1x512xf32>
    %13 = vector.extract_strided_slice %12 {offsets = [0, 0], sizes = [1, 384], strides = [1, 1]} : vector<1x512xf32> to vector<1x384xf32>
    %cst_16 = arith.constant 5.000000e-01 : f32
    %14 = vector.broadcast %cst_16 : f32 to vector<1x384xf32>
    %15 = arith.mulf %14, %13 : vector<1x384xf32>
    %16 = math.tanh %15 : vector<1x384xf32>
    %cst_17 = arith.constant 5.000000e-01 : f32
    %17 = vector.broadcast %cst_17 : f32 to vector<1x384xf32>
    %18 = arith.mulf %17, %16 : vector<1x384xf32>
    %cst_18 = arith.constant 5.000000e-01 : f32
    %19 = vector.broadcast %cst_18 : f32 to vector<1x384xf32>
    %20 = arith.addf %18, %19 : vector<1x384xf32>
    %21 = vector.extract_strided_slice %20 {offsets = [0, 0], sizes = [1, 128], strides = [1, 1]} : vector<1x384xf32> to vector<1x128xf32>
    %22 = vector.extract_strided_slice %20 {offsets = [0, 128], sizes = [1, 128], strides = [1, 1]} : vector<1x384xf32> to vector<1x128xf32>
    %23 = vector.extract_strided_slice %20 {offsets = [0, 256], sizes = [1, 128], strides = [1, 1]} : vector<1x384xf32> to vector<1x128xf32>
    %24 = vector.extract_strided_slice %12 {offsets = [0, 384], sizes = [1, 128], strides = [1, 1]} : vector<1x512xf32> to vector<1x128xf32>
    %25 = math.tanh %24 : vector<1x128xf32>
    %26 = arith.mulf %22, %8 : vector<1x128xf32>
    %27 = arith.mulf %21, %25 : vector<1x128xf32>
    %28 = arith.addf %26, %27 : vector<1x128xf32>
    %29 = math.tanh %28 : vector<1x128xf32>
    %30 = arith.mulf %23, %29 : vector<1x128xf32>
    %c0_19 = arith.constant 0 : index
    %c0_20 = arith.constant 0 : index
    %31 = vector.load %arg12[%c0_19, %c0_20] : memref<8x128xf32, #tpu.memory_space<vmem>>, vector<1x128xf32>
    tpu.vector_store %arg12[%c0_19, %c0_20], %30 {strides = array<i32>} : memref<8x128xf32, #tpu.memory_space<vmem>>, vector<1x128xf32>,
    %c1 = arith.constant 1 : index
    %c0_21 = arith.constant 0 : index
    %32 = vector.load %arg11[%c1, %c0_21] : memref<8x512xf32, #tpu.memory_space<vmem>>, vector<1x512xf32>
    %c0_22 = arith.constant 0 : index
    %c0_23 = arith.constant 0 : index
    %33 = vector.load %arg2[%c0_22, %c0_23] : memref<128x512xf32, #tpu.memory_space<vmem>>, vector<128x512xf32>
    %cst_24 = arith.constant dense<0.000000e+00> : vector<1x512xf32>
    %34 = tpu.matmul %30, %33, %cst_24 {dimension_numbers = #tpu.dot_dimension_numbers<[1], [0], [0], [1], [0, 0, 1, 1], [], []>} : vector<1x128xf32>, vector<128x512xf32>, vector<1x512xf32> -> vector<1x512xf32>
    %35 = arith.addf %32, %34 : vector<1x512xf32>
    %36 = vector.extract_strided_slice %35 {offsets = [0, 0], sizes = [1, 384], strides = [1, 1]} : vector<1x512xf32> to vector<1x384xf32>
    %cst_25 = arith.constant 5.000000e-01 : f32
    %37 = vector.broadcast %cst_25 : f32 to vector<1x384xf32>
    %38 = arith.mulf %37, %36 : vector<1x384xf32>
    %39 = math.tanh %38 : vector<1x384xf32>
    %cst_26 = arith.constant 5.000000e-01 : f32
    %40 = vector.broadcast %cst_26 : f32 to vector<1x384xf32>
    %41 = arith.mulf %40, %39 : vector<1x384xf32>
    %cst_27 = arith.constant 5.000000e-01 : f32
    %42 = vector.broadcast %cst_27 : f32 to vector<1x384xf32>
    %43 = arith.addf %41, %42 : vector<1x384xf32>
    %44 = vector.extract_strided_slice %43 {offsets = [0, 0], sizes = [1, 128], strides = [1, 1]} : vector<1x384xf32> to vector<1x128xf32>
    %45 = vector.extract_strided_slice %43 {offsets = [0, 128], sizes = [1, 128], strides = [1, 1]} : vector<1x384xf32> to vector<1x128xf32>
    %46 = vector.extract_strided_slice %43 {offsets = [0, 256], sizes = [1, 128], strides = [1, 1]} : vector<1x384xf32> to vector<1x128xf32>
    %47 = vector.extract_strided_slice %35 {offsets = [0, 384], sizes = [1, 128], strides = [1, 1]} : vector<1x512xf32> to vector<1x128xf32>
    %48 = math.tanh %47 : vector<1x128xf32>
    %49 = arith.mulf %45, %28 : vector<1x128xf32>
    %50 = arith.mulf %44, %48 : vector<1x128xf32>
    %51 = arith.addf %49, %50 : vector<1x128xf32>
    %52 = math.tanh %51 : vector<1x128xf32>
    %53 = arith.mulf %46, %52 : vector<1x128xf32>
    %c1_28 = arith.constant 1 : index
    %c0_29 = arith.constant 0 : index
    %54 = vector.load %arg12[%c1_28, %c0_29] : memref<8x128xf32, #tpu.memory_space<vmem>>, vector<1x128xf32>
    tpu.vector_store %arg12[%c1_28, %c0_29], %53 {strides = array<i32>} : memref<8x128xf32, #tpu.memory_space<vmem>>, vector<1x128xf32>,
    %c2 = arith.constant 2 : index
    %c0_30 = arith.constant 0 : index
    %55 = vector.load %arg11[%c2, %c0_30] : memref<8x512xf32, #tpu.memory_space<vmem>>, vector<1x512xf32>
    %c0_31 = arith.constant 0 : index
    %c0_32 = arith.constant 0 : index
    %56 = vector.load %arg2[%c0_31, %c0_32] : memref<128x512xf32, #tpu.memory_space<vmem>>, vector<128x512xf32>
    %cst_33 = arith.constant dense<0.000000e+00> : vector<1x512xf32>
    %57 = tpu.matmul %53, %56, %cst_33 {dimension_numbers = #tpu.dot_dimension_numbers<[1], [0], [0], [1], [0, 0, 1, 1], [], []>} : vector<1x128xf32>, vector<128x512xf32>, vector<1x512xf32> -> vector<1x512xf32>
    %58 = arith.addf %55, %57 : vector<1x512xf32>
    %59 = vector.extract_strided_slice %58 {offsets = [0, 0], sizes = [1, 384], strides = [1, 1]} : vector<1x512xf32> to vector<1x384xf32>
    %cst_34 = arith.constant 5.000000e-01 : f32
    %60 = vector.broadcast %cst_34 : f32 to vector<1x384xf32>
    %61 = arith.mulf %60, %59 : vector<1x384xf32>
    %62 = math.tanh %61 : vector<1x384xf32>
    %cst_35 = arith.constant 5.000000e-01 : f32
    %63 = vector.broadcast %cst_35 : f32 to vector<1x384xf32>
    %64 = arith.mulf %63, %62 : vector<1x384xf32>
    %cst_36 = arith.constant 5.000000e-01 : f32
    %65 = vector.broadcast %cst_36 : f32 to vector<1x384xf32>
    %66 = arith.addf %64, %65 : vector<1x384xf32>
    %67 = vector.extract_strided_slice %66 {offsets = [0, 0], sizes = [1, 128], strides = [1, 1]} : vector<1x384xf32> to vector<1x128xf32>
    %68 = vector.extract_strided_slice %66 {offsets = [0, 128], sizes = [1, 128], strides = [1, 1]} : vector<1x384xf32> to vector<1x128xf32>
    %69 = vector.extract_strided_slice %66 {offsets = [0, 256], sizes = [1, 128], strides = [1, 1]} : vector<1x384xf32> to vector<1x128xf32>
    %70 = vector.extract_strided_slice %58 {offsets = [0, 384], sizes = [1, 128], strides = [1, 1]} : vector<1x512xf32> to vector<1x128xf32>
    %71 = math.tanh %70 : vector<1x128xf32>
    %72 = arith.mulf %68, %51 : vector<1x128xf32>
    %73 = arith.mulf %67, %71 : vector<1x128xf32>
    %74 = arith.addf %72, %73 : vector<1x128xf32>
    %75 = math.tanh %74 : vector<1x128xf32>
    %76 = arith.mulf %69, %75 : vector<1x128xf32>
    %c2_37 = arith.constant 2 : index
    %c0_38 = arith.constant 0 : index
    %77 = vector.load %arg12[%c2_37, %c0_38] : memref<8x128xf32, #tpu.memory_space<vmem>>, vector<1x128xf32>
    tpu.vector_store %arg12[%c2_37, %c0_38], %76 {strides = array<i32>} : memref<8x128xf32, #tpu.memory_space<vmem>>, vector<1x128xf32>,
    %c3 = arith.constant 3 : index
    %c0_39 = arith.constant 0 : index
    %78 = vector.load %arg11[%c3, %c0_39] : memref<8x512xf32, #tpu.memory_space<vmem>>, vector<1x512xf32>
    %c0_40 = arith.constant 0 : index
    %c0_41 = arith.constant 0 : index
    %79 = vector.load %arg2[%c0_40, %c0_41] : memref<128x512xf32, #tpu.memory_space<vmem>>, vector<128x512xf32>
    %cst_42 = arith.constant dense<0.000000e+00> : vector<1x512xf32>
    %80 = tpu.matmul %76, %79, %cst_42 {dimension_numbers = #tpu.dot_dimension_numbers<[1], [0], [0], [1], [0, 0, 1, 1], [], []>} : vector<1x128xf32>, vector<128x512xf32>, vector<1x512xf32> -> vector<1x512xf32>
    %81 = arith.addf %78, %80 : vector<1x512xf32>
    %82 = vector.extract_strided_slice %81 {offsets = [0, 0], sizes = [1, 384], strides = [1, 1]} : vector<1x512xf32> to vector<1x384xf32>
    %cst_43 = arith.constant 5.000000e-01 : f32
    %83 = vector.broadcast %cst_43 : f32 to vector<1x384xf32>
    %84 = arith.mulf %83, %82 : vector<1x384xf32>
    %85 = math.tanh %84 : vector<1x384xf32>
    %cst_44 = arith.constant 5.000000e-01 : f32
    %86 = vector.broadcast %cst_44 : f32 to vector<1x384xf32>
    %87 = arith.mulf %86, %85 : vector<1x384xf32>
    %cst_45 = arith.constant 5.000000e-01 : f32
    %88 = vector.broadcast %cst_45 : f32 to vector<1x384xf32>
    %89 = arith.addf %87, %88 : vector<1x384xf32>
    %90 = vector.extract_strided_slice %89 {offsets = [0, 0], sizes = [1, 128], strides = [1, 1]} : vector<1x384xf32> to vector<1x128xf32>
    %91 = vector.extract_strided_slice %89 {offsets = [0, 128], sizes = [1, 128], strides = [1, 1]} : vector<1x384xf32> to vector<1x128xf32>
    %92 = vector.extract_strided_slice %89 {offsets = [0, 256], sizes = [1, 128], strides = [1, 1]} : vector<1x384xf32> to vector<1x128xf32>
    %93 = vector.extract_strided_slice %81 {offsets = [0, 384], sizes = [1, 128], strides = [1, 1]} : vector<1x512xf32> to vector<1x128xf32>
    %94 = math.tanh %93 : vector<1x128xf32>
    %95 = arith.mulf %91, %74 : vector<1x128xf32>
    %96 = arith.mulf %90, %94 : vector<1x128xf32>
    %97 = arith.addf %95, %96 : vector<1x128xf32>
    %98 = math.tanh %97 : vector<1x128xf32>
    %99 = arith.mulf %92, %98 : vector<1x128xf32>
    %c3_46 = arith.constant 3 : index
    %c0_47 = arith.constant 0 : index
    %100 = vector.load %arg12[%c3_46, %c0_47] : memref<8x128xf32, #tpu.memory_space<vmem>>, vector<1x128xf32>
    tpu.vector_store %arg12[%c3_46, %c0_47], %99 {strides = array<i32>} : memref<8x128xf32, #tpu.memory_space<vmem>>, vector<1x128xf32>,
    %c4 = arith.constant 4 : index
    %c0_48 = arith.constant 0 : index
    %101 = vector.load %arg11[%c4, %c0_48] : memref<8x512xf32, #tpu.memory_space<vmem>>, vector<1x512xf32>
    %c0_49 = arith.constant 0 : index
    %c0_50 = arith.constant 0 : index
    %102 = vector.load %arg2[%c0_49, %c0_50] : memref<128x512xf32, #tpu.memory_space<vmem>>, vector<128x512xf32>
    %cst_51 = arith.constant dense<0.000000e+00> : vector<1x512xf32>
    %103 = tpu.matmul %99, %102, %cst_51 {dimension_numbers = #tpu.dot_dimension_numbers<[1], [0], [0], [1], [0, 0, 1, 1], [], []>} : vector<1x128xf32>, vector<128x512xf32>, vector<1x512xf32> -> vector<1x512xf32>
    %104 = arith.addf %101, %103 : vector<1x512xf32>
    %105 = vector.extract_strided_slice %104 {offsets = [0, 0], sizes = [1, 384], strides = [1, 1]} : vector<1x512xf32> to vector<1x384xf32>
    %cst_52 = arith.constant 5.000000e-01 : f32
    %106 = vector.broadcast %cst_52 : f32 to vector<1x384xf32>
    %107 = arith.mulf %106, %105 : vector<1x384xf32>
    %108 = math.tanh %107 : vector<1x384xf32>
    %cst_53 = arith.constant 5.000000e-01 : f32
    %109 = vector.broadcast %cst_53 : f32 to vector<1x384xf32>
    %110 = arith.mulf %109, %108 : vector<1x384xf32>
    %cst_54 = arith.constant 5.000000e-01 : f32
    %111 = vector.broadcast %cst_54 : f32 to vector<1x384xf32>
    %112 = arith.addf %110, %111 : vector<1x384xf32>
    %113 = vector.extract_strided_slice %112 {offsets = [0, 0], sizes = [1, 128], strides = [1, 1]} : vector<1x384xf32> to vector<1x128xf32>
    %114 = vector.extract_strided_slice %112 {offsets = [0, 128], sizes = [1, 128], strides = [1, 1]} : vector<1x384xf32> to vector<1x128xf32>
    %115 = vector.extract_strided_slice %112 {offsets = [0, 256], sizes = [1, 128], strides = [1, 1]} : vector<1x384xf32> to vector<1x128xf32>
    %116 = vector.extract_strided_slice %104 {offsets = [0, 384], sizes = [1, 128], strides = [1, 1]} : vector<1x512xf32> to vector<1x128xf32>
    %117 = math.tanh %116 : vector<1x128xf32>
    %118 = arith.mulf %114, %97 : vector<1x128xf32>
    %119 = arith.mulf %113, %117 : vector<1x128xf32>
    %120 = arith.addf %118, %119 : vector<1x128xf32>
    %121 = math.tanh %120 : vector<1x128xf32>
    %122 = arith.mulf %115, %121 : vector<1x128xf32>
    %c4_55 = arith.constant 4 : index
    %c0_56 = arith.constant 0 : index
    %123 = vector.load %arg12[%c4_55, %c0_56] : memref<8x128xf32, #tpu.memory_space<vmem>>, vector<1x128xf32>
    tpu.vector_store %arg12[%c4_55, %c0_56], %122 {strides = array<i32>} : memref<8x128xf32, #tpu.memory_space<vmem>>, vector<1x128xf32>,
    %c5 = arith.constant 5 : index
    %c0_57 = arith.constant 0 : index
    %124 = vector.load %arg11[%c5, %c0_57] : memref<8x512xf32, #tpu.memory_space<vmem>>, vector<1x512xf32>
    %c0_58 = arith.constant 0 : index
    %c0_59 = arith.constant 0 : index
    %125 = vector.load %arg2[%c0_58, %c0_59] : memref<128x512xf32, #tpu.memory_space<vmem>>, vector<128x512xf32>
    %cst_60 = arith.constant dense<0.000000e+00> : vector<1x512xf32>
    %126 = tpu.matmul %122, %125, %cst_60 {dimension_numbers = #tpu.dot_dimension_numbers<[1], [0], [0], [1], [0, 0, 1, 1], [], []>} : vector<1x128xf32>, vector<128x512xf32>, vector<1x512xf32> -> vector<1x512xf32>
    %127 = arith.addf %124, %126 : vector<1x512xf32>
    %128 = vector.extract_strided_slice %127 {offsets = [0, 0], sizes = [1, 384], strides = [1, 1]} : vector<1x512xf32> to vector<1x384xf32>
    %cst_61 = arith.constant 5.000000e-01 : f32
    %129 = vector.broadcast %cst_61 : f32 to vector<1x384xf32>
    %130 = arith.mulf %129, %128 : vector<1x384xf32>
    %131 = math.tanh %130 : vector<1x384xf32>
    %cst_62 = arith.constant 5.000000e-01 : f32
    %132 = vector.broadcast %cst_62 : f32 to vector<1x384xf32>
    %133 = arith.mulf %132, %131 : vector<1x384xf32>
    %cst_63 = arith.constant 5.000000e-01 : f32
    %134 = vector.broadcast %cst_63 : f32 to vector<1x384xf32>
    %135 = arith.addf %133, %134 : vector<1x384xf32>
    %136 = vector.extract_strided_slice %135 {offsets = [0, 0], sizes = [1, 128], strides = [1, 1]} : vector<1x384xf32> to vector<1x128xf32>
    %137 = vector.extract_strided_slice %135 {offsets = [0, 128], sizes = [1, 128], strides = [1, 1]} : vector<1x384xf32> to vector<1x128xf32>
    %138 = vector.extract_strided_slice %135 {offsets = [0, 256], sizes = [1, 128], strides = [1, 1]} : vector<1x384xf32> to vector<1x128xf32>
    %139 = vector.extract_strided_slice %127 {offsets = [0, 384], sizes = [1, 128], strides = [1, 1]} : vector<1x512xf32> to vector<1x128xf32>
    %140 = math.tanh %139 : vector<1x128xf32>
    %141 = arith.mulf %137, %120 : vector<1x128xf32>
    %142 = arith.mulf %136, %140 : vector<1x128xf32>
    %143 = arith.addf %141, %142 : vector<1x128xf32>
    %144 = math.tanh %143 : vector<1x128xf32>
    %145 = arith.mulf %138, %144 : vector<1x128xf32>
    %c5_64 = arith.constant 5 : index
    %c0_65 = arith.constant 0 : index
    %146 = vector.load %arg12[%c5_64, %c0_65] : memref<8x128xf32, #tpu.memory_space<vmem>>, vector<1x128xf32>
    tpu.vector_store %arg12[%c5_64, %c0_65], %145 {strides = array<i32>} : memref<8x128xf32, #tpu.memory_space<vmem>>, vector<1x128xf32>,
    %c6 = arith.constant 6 : index
    %c0_66 = arith.constant 0 : index
    %147 = vector.load %arg11[%c6, %c0_66] : memref<8x512xf32, #tpu.memory_space<vmem>>, vector<1x512xf32>
    %c0_67 = arith.constant 0 : index
    %c0_68 = arith.constant 0 : index
    %148 = vector.load %arg2[%c0_67, %c0_68] : memref<128x512xf32, #tpu.memory_space<vmem>>, vector<128x512xf32>
    %cst_69 = arith.constant dense<0.000000e+00> : vector<1x512xf32>
    %149 = tpu.matmul %145, %148, %cst_69 {dimension_numbers = #tpu.dot_dimension_numbers<[1], [0], [0], [1], [0, 0, 1, 1], [], []>} : vector<1x128xf32>, vector<128x512xf32>, vector<1x512xf32> -> vector<1x512xf32>
    %150 = arith.addf %147, %149 : vector<1x512xf32>
    %151 = vector.extract_strided_slice %150 {offsets = [0, 0], sizes = [1, 384], strides = [1, 1]} : vector<1x512xf32> to vector<1x384xf32>
    %cst_70 = arith.constant 5.000000e-01 : f32
    %152 = vector.broadcast %cst_70 : f32 to vector<1x384xf32>
    %153 = arith.mulf %152, %151 : vector<1x384xf32>
    %154 = math.tanh %153 : vector<1x384xf32>
    %cst_71 = arith.constant 5.000000e-01 : f32
    %155 = vector.broadcast %cst_71 : f32 to vector<1x384xf32>
    %156 = arith.mulf %155, %154 : vector<1x384xf32>
    %cst_72 = arith.constant 5.000000e-01 : f32
    %157 = vector.broadcast %cst_72 : f32 to vector<1x384xf32>
    %158 = arith.addf %156, %157 : vector<1x384xf32>
    %159 = vector.extract_strided_slice %158 {offsets = [0, 0], sizes = [1, 128], strides = [1, 1]} : vector<1x384xf32> to vector<1x128xf32>
    %160 = vector.extract_strided_slice %158 {offsets = [0, 128], sizes = [1, 128], strides = [1, 1]} : vector<1x384xf32> to vector<1x128xf32>
    %161 = vector.extract_strided_slice %158 {offsets = [0, 256], sizes = [1, 128], strides = [1, 1]} : vector<1x384xf32> to vector<1x128xf32>
    %162 = vector.extract_strided_slice %150 {offsets = [0, 384], sizes = [1, 128], strides = [1, 1]} : vector<1x512xf32> to vector<1x128xf32>
    %163 = math.tanh %162 : vector<1x128xf32>
    %164 = arith.mulf %160, %143 : vector<1x128xf32>
    %165 = arith.mulf %159, %163 : vector<1x128xf32>
    %166 = arith.addf %164, %165 : vector<1x128xf32>
    %167 = math.tanh %166 : vector<1x128xf32>
    %168 = arith.mulf %161, %167 : vector<1x128xf32>
    %c6_73 = arith.constant 6 : index
    %c0_74 = arith.constant 0 : index
    %169 = vector.load %arg12[%c6_73, %c0_74] : memref<8x128xf32, #tpu.memory_space<vmem>>, vector<1x128xf32>
    tpu.vector_store %arg12[%c6_73, %c0_74], %168 {strides = array<i32>} : memref<8x128xf32, #tpu.memory_space<vmem>>, vector<1x128xf32>,
    %c7 = arith.constant 7 : index
    %c0_75 = arith.constant 0 : index
    %170 = vector.load %arg11[%c7, %c0_75] : memref<8x512xf32, #tpu.memory_space<vmem>>, vector<1x512xf32>
    %c0_76 = arith.constant 0 : index
    %c0_77 = arith.constant 0 : index
    %171 = vector.load %arg2[%c0_76, %c0_77] : memref<128x512xf32, #tpu.memory_space<vmem>>, vector<128x512xf32>
    %cst_78 = arith.constant dense<0.000000e+00> : vector<1x512xf32>
    %172 = tpu.matmul %168, %171, %cst_78 {dimension_numbers = #tpu.dot_dimension_numbers<[1], [0], [0], [1], [0, 0, 1, 1], [], []>} : vector<1x128xf32>, vector<128x512xf32>, vector<1x512xf32> -> vector<1x512xf32>
    %173 = arith.addf %170, %172 : vector<1x512xf32>
    %174 = vector.extract_strided_slice %173 {offsets = [0, 0], sizes = [1, 384], strides = [1, 1]} : vector<1x512xf32> to vector<1x384xf32>
    %cst_79 = arith.constant 5.000000e-01 : f32
    %175 = vector.broadcast %cst_79 : f32 to vector<1x384xf32>
    %176 = arith.mulf %175, %174 : vector<1x384xf32>
    %177 = math.tanh %176 : vector<1x384xf32>
    %cst_80 = arith.constant 5.000000e-01 : f32
    %178 = vector.broadcast %cst_80 : f32 to vector<1x384xf32>
    %179 = arith.mulf %178, %177 : vector<1x384xf32>
    %cst_81 = arith.constant 5.000000e-01 : f32
    %180 = vector.broadcast %cst_81 : f32 to vector<1x384xf32>
    %181 = arith.addf %179, %180 : vector<1x384xf32>
    %182 = vector.extract_strided_slice %181 {offsets = [0, 0], sizes = [1, 128], strides = [1, 1]} : vector<1x384xf32> to vector<1x128xf32>
    %183 = vector.extract_strided_slice %181 {offsets = [0, 128], sizes = [1, 128], strides = [1, 1]} : vector<1x384xf32> to vector<1x128xf32>
    %184 = vector.extract_strided_slice %181 {offsets = [0, 256], sizes = [1, 128], strides = [1, 1]} : vector<1x384xf32> to vector<1x128xf32>
    %185 = vector.extract_strided_slice %173 {offsets = [0, 384], sizes = [1, 128], strides = [1, 1]} : vector<1x512xf32> to vector<1x128xf32>
    %186 = math.tanh %185 : vector<1x128xf32>
    %187 = arith.mulf %183, %166 : vector<1x128xf32>
    %188 = arith.mulf %182, %186 : vector<1x128xf32>
    %189 = arith.addf %187, %188 : vector<1x128xf32>
    %190 = math.tanh %189 : vector<1x128xf32>
    %191 = arith.mulf %184, %190 : vector<1x128xf32>
    %c7_82 = arith.constant 7 : index
    %c0_83 = arith.constant 0 : index
    %192 = vector.load %arg12[%c7_82, %c0_83] : memref<8x128xf32, #tpu.memory_space<vmem>>, vector<1x128xf32>
    tpu.vector_store %arg12[%c7_82, %c0_83], %191 {strides = array<i32>} : memref<8x128xf32, #tpu.memory_space<vmem>>, vector<1x128xf32>,
    %c0_84 = arith.constant 0 : index
    %c0_85 = arith.constant 0 : index
    %193 = vector.load %arg12[%c0_84, %c0_85] : memref<8x128xf32, #tpu.memory_space<vmem>>, vector<8x128xf32>
    %c0_86 = arith.constant 0 : index
    %c0_87 = arith.constant 0 : index
    %194 = vector.load %arg4[%c0_86, %c0_87] : memref<128x128xf32, #tpu.memory_space<vmem>>, vector<128x128xf32>
    %cst_88 = arith.constant dense<0.000000e+00> : vector<8x128xf32>
    %195 = tpu.matmul %193, %194, %cst_88 {dimension_numbers = #tpu.dot_dimension_numbers<[1], [0], [0], [1], [0, 0, 1, 1], [], []>} : vector<8x128xf32>, vector<128x128xf32>, vector<8x128xf32> -> vector<8x128xf32>
    %c0_89 = arith.constant 0 : index
    %c0_90 = arith.constant 0 : index
    %196 = vector.load %arg5[%c0_89, %c0_90] : memref<1x128xf32, #tpu.memory_space<vmem>>, vector<1x128xf32>
    %197 = vector.broadcast %196 : vector<1x128xf32> to vector<8x128xf32>
    %198 = arith.addf %195, %197 : vector<8x128xf32>
    %c0_91 = arith.constant 0 : index
    %c0_92 = arith.constant 0 : index
    %199 = vector.load %arg8[%c0_91, %c0_92] : memref<8x128xf32, #tpu.memory_space<vmem>>, vector<8x128xf32>
    tpu.vector_store %arg8[%c0_91, %c0_92], %198 {strides = array<i32>} : memref<8x128xf32, #tpu.memory_space<vmem>>, vector<8x128xf32>,
    %c0_93 = arith.constant 0 : index
    %c0_94 = arith.constant 0 : index
    %200 = vector.load %arg9[%c0_93, %c0_94] : memref<1x128xf32, #tpu.memory_space<vmem>>, vector<1x128xf32>
    tpu.vector_store %arg9[%c0_93, %c0_94], %191 {strides = array<i32>} : memref<1x128xf32, #tpu.memory_space<vmem>>, vector<1x128xf32>,
    %c0_95 = arith.constant 0 : index
    %c0_96 = arith.constant 0 : index
    %201 = vector.load %arg10[%c0_95, %c0_96] : memref<1x128xf32, #tpu.memory_space<vmem>>, vector<1x128xf32>
    tpu.vector_store %arg10[%c0_95, %c0_96], %189 {strides = array<i32>} : memref<1x128xf32, #tpu.memory_space<vmem>>, vector<1x128xf32>,
    return
  }
}

</mosaic_0001>

<bundles_post_ra>
// kernel: tpu_custom_call.1
= control target key start
LH: loop header
LB: loop body
LE: loop exit
PB: predicated region body
PF: predicated region fallthrough
CT: control target
= control target key end

     0   :  { %16 = vsyncpa [#allocation5], 0  ;;  %s2906_s0 = inlined_call_operand.hbm [shape: f32[8,8], index: 0, kind: input, shape index: {}]   ;;  %s2907_s1 = inlined_call_operand.hbm [shape: f32[8,512], index: 1, kind: input, shape index: {}]   ;;  %s2908_s2 = inlined_call_operand.hbm [shape: f32[128,512], index: 2, kind: input, shape index: {}]   ;;  %s2909_s3 = inlined_call_operand.hbm [shape: f32[1,512], index: 3, kind: input, shape index: {}]   ;;  %s2910_s4 = inlined_call_operand.hbm [shape: f32[128,128], index: 4, kind: input, shape index: {}]   ;;  %s2911_s5 = inlined_call_operand.vmem [shape: f32[1,128], index: 5, kind: input, shape index: {}]   ;;  %s2912_s6 = inlined_call_operand.vmem [shape: f32[1,128], index: 6, kind: input, shape index: {}]   ;;  %s2913_s7 = inlined_call_operand.vmem [shape: f32[1,128], index: 7, kind: input, shape index: {}]   ;;  %s2914_s8 = inlined_call_operand.hbm [shape: f32[8,128], index: 8, kind: output, shape index: {0}]   ;;  %s2915_s9 = inlined_call_operand.hbm [shape: f32[1,128], index: 9, kind: output, shape index: {1}]   ;;  %s2916_s10 = inlined_call_operand.hbm [shape: f32[1,128], index: 10, kind: output, shape index: {2}]  }
   0x1   :  { %17 = vsyncpa [#allocation8], 0 }
   0x2   :  { %18 = vsyncpa [#allocation11], 0 }
   0x3   :  { %19 = vsyncpa [#allocation6], 0  ;;  %s37_s15 = sshll.u32 %s2907_s1, 4  ;;  %s38_s15 = int_to_ptr.hbm [resolvable:$true] %s37_s15 }
   0x4   :  { %20 = vsyncpa [#allocation15], 0  ;;  %s1990_s16 = smov [#allocation7]   ;;  %s61_s20 = sshll.u32 %s2909_s3, 4  ;;  %s62_s20 = int_to_ptr.hbm [resolvable:$true] %s61_s20 }
   0x5   :  { %s39_s17 = sshll.u32 %s1990_s16, 4  ;;  %s1991_s21 = smov [#allocation10]   ;;  %s40_s17 = int_to_ptr.vmem [resolvable:$true] %s39_s17 }
   0x6   :  { %42 = dma.hbm_to_vmem [thread:$0]  %s38_s15, 512, %s40_s17, [#allocation8]  }
   0x7   :  { %s63_s22 = sshll.u32 %s1991_s21, 4  ;;  %s26_s25 = sshll.u32 %s2906_s0, 4  ;;  %s64_s22 = int_to_ptr.vmem [resolvable:$true] %s63_s22  ;;  %s27_s25 = int_to_ptr.hbm [resolvable:$true] %s26_s25 }
   0x8   :  { %66 = dma.hbm_to_vmem [thread:$0]  %s62_s20, 64, %s64_s22, [#allocation11]  }
   0x9   :  { %s47_s27 = sshll.u32 %s2908_s2, 4  ;;  %s1992_s28 = smov [#allocation4]   ;;  %s48_s27 = int_to_ptr.hbm [resolvable:$true] %s47_s27 }
   0xa   :  { %s28_s29 = sshll.u32 %s1992_s28, 4  ;;  %s1993_s3 = smov [#allocation9]   ;;  %s29_s29 = int_to_ptr.vmem [resolvable:$true] %s28_s29 }
   0xb   :  { %31 = dma.hbm_to_vmem [thread:$0]  %s27_s25, 128, %s29_s29, [#allocation5]  }
   0xc   :  { %s49_s30 = sshll.u32 %s1993_s3, 4  ;;  %s1994_s11 = smov 512   ;;  %s50_s30 = int_to_ptr.vmem [resolvable:$true] %s49_s30 }
   0xd   :  { %s1995_s12 = smov 32   ;;  %s71_s14 = sshll.u32 %s2910_s4, 4  ;;  %s72_s14 = int_to_ptr.hbm [resolvable:$true] %s71_s14 }
   0xe   :  { %55 = dma.hbm_to_vmem [thread:$0]  %s48_s27, 8192, %s50_s30, [#allocation8], %s1994_s11, %s1994_s11, %s1995_s12  }
   0xf   :  { %s1996_s15 = smov [#allocation12]   ;;  %s1997_s2 = smov 128  }
  0x10   :  { %s73_s16 = sshll.u32 %s1996_s15, 4  ;;  %s1998_s17 = smov 8   ;;  %s74_s16 = int_to_ptr.vmem [resolvable:$true] %s73_s16 }
  0x11   :  { %79 = dma.hbm_to_vmem [thread:$0]  %s72_s14, 2048, %s74_s16, [#allocation11], %s1997_s2, %s1997_s2, %s1998_s17  }
  0x12   :  { %1980 = dma.done.wait [#allocation5], 128  }
  0x13   :  { %1981 = vsyncadd [#allocation5], 4294967168 }
  0x14   :  { %1982 = dma.done.wait [#allocation8], 8704  }
  0x15   :  { %1983 = vsyncadd [#allocation8], 4294958592 }
  0x16   :  { %1984 = dma.done.wait [#allocation11], 2112  }
  0x17   :  { %1985 = vsyncadd [#allocation11], 4294965184  ;;  %vm121_vm0 = vcmask 64512   ;;  %v107_v0 = vld [vmem:[#allocation7] sm:$0xff]  ;;  %v109_v1 = vld [vmem:[#allocation7 + $0x10] sm:$0xff]  ;;  %vm363_vm1 = vcmask 1040384  }
  0x18   :  { %v110_v2 = vld [vmem:[#allocation7 + $0x18] sm:$0xff]  ;;  %140 = vmatpush.msra.mxu1 %v107_v0  ;;  %180 = vmatpush.msra.mxu2 %v109_v1  ;;  %v2072_v4 = vld [vmem:[#allocation9 + $0x1f0] sm:$0xff]  ;;  %v108_v8 = vld [vmem:[#allocation7 + $0x8] sm:$0xff]  ;;  %vm365_vm2 = vcmask 1042434   ;;  %vm367_vm3 = vcmask 1041408   ;;  %s1691_s23 = sshll.u32 %s2915_s9, 4  ;;  %s1692_s23 = int_to_ptr.hbm [resolvable:$true] %s1691_s23 }
  0x19   :  { %v106_v3 = vld [vmem:[#allocation4] sm:$0xff]  ;;  %200 = vmatpush.msra.mxu3 %v110_v2  ;;  %v2077_v6 = vld [vmem:[#allocation9 + $0x1d0] sm:$0xff]  ;;  %v2089_v11 = vld [vmem:[#allocation9 + $0x1e0] sm:$0xff]  ;;  %s2000_s24 = smov [#allocation16]   ;;  %s1702_s27 = sshll.u32 %s2916_s10, 4  ;;  %s1703_s27 = int_to_ptr.hbm [resolvable:$true] %s1702_s27 }
  0x1a   :  { %v2074_v5 = vld [vmem:[#allocation9 + $0x1f8] sm:$0xff]  ;;  %1723 = vmatmul.msk.f32.vlgmr.msra.gmra.mxu1 %vm121_vm0, %v106_v3  ;;  %316 = vmatpush.msrb.mxu2 %v2072_v4  ;;  %v2085_v9 = vld [vmem:[#allocation9 + $0x1b0] sm:$0xff]  ;;  %v2093_v12 = vld [vmem:[#allocation9 + $0x1e8] sm:$0xff]  ;;  %s1700_s25 = sshll.u32 %s2000_s24, 4  ;;  %s2001_s3 = smov [#allocation13]   ;;  %s1701_s25 = int_to_ptr.vmem [resolvable:$true] %s1700_s25 }
  0x1b   :  { %v2079_v7 = vld [vmem:[#allocation9 + $0x1d8] sm:$0xff]  ;;  %336 = vmatpush.msrb.mxu3 %v2074_v5  ;;  %1725 = vmatmul.msk.f32.vlgmr.msra.gmra.mxu2 %vm121_vm0, %v106_v3  ;;  %v2095_v13 = vld [vmem:[#allocation9 + $0x190] sm:$0xff]  ;;  %v2100_v15 = vld [vmem:[#allocation9 + $0x1c0] sm:$0xff]  ;;  %s1678_s30 = sshll.u32 %s2001_s3, 4  ;;  %s1680_s12 = sshll.u32 %s2914_s8, 4  ;;  %s1679_s30 = int_to_ptr.vmem [resolvable:$true] %s1678_s30  ;;  %s1681_s12 = int_to_ptr.hbm [resolvable:$true] %s1680_s12 }
  0x1c   :  { %1726 = vmatmul.msk.f32.vlgmr.msra.gmra.mxu3 %vm121_vm0, %v106_v3  ;;  %v2087_v10 = vld [vmem:[#allocation9 + $0x1b8] sm:$0xff]  ;;  %317 = vmatpush.msrb.mxu2 %v2077_v6  ;;  %v2104_v16 = vld [vmem:[#allocation9 + $0x1a0] sm:$0xff]  ;;  %v2107_v17 = vld [vmem:[#allocation9 + $0x1c8] sm:$0xff] }
  0x1d   :  { %337 = vmatpush.msrb.mxu3 %v2079_v7  ;;  %160 = vmatpush.msrb.mxu1 %v108_v8  ;;  %v2097_v14 = vld [vmem:[#allocation9 + $0x198] sm:$0xff]  ;;  %v2109_v18 = vld [vmem:[#allocation9 + $0x170] sm:$0xff]  ;;  %v2116_v20 = vld [vmem:[#allocation9 + $0x180] sm:$0xff] }
  0x1e   :  { %276 = vmatpush.msra.mxu0 %v2089_v11  ;;  %318 = vmatpush.msrb.mxu2 %v2085_v9  ;;  %v2114_v19 = vld [vmem:[#allocation9 + $0x178] sm:$0xff]  ;;  %v2119_v21 = vld [vmem:[#allocation9 + $0x1a8] sm:$0xff]  ;;  %v2121_v22 = vld [vmem:[#allocation9 + $0x150] sm:$0xff] }
  0x1f   :  { %338 = vmatpush.msrb.mxu3 %v2087_v10  ;;  %296 = vmatpush.msra.mxu1 %v2093_v12  ;;  %v2126_v23 = vld [vmem:[#allocation9 + $0x158] sm:$0xff]  ;;  %v2128_v24 = vld [vmem:[#allocation9 + $0x160] sm:$0xff]  ;;  %v2131_v25 = vld [vmem:[#allocation9 + $0x188] sm:$0xff] }
  0x20   :  { %277 = vmatpush.msra.mxu0 %v2100_v15  ;;  %319 = vmatpush.msrb.mxu2 %v2095_v13  ;;  %v2133_v26 = vld [vmem:[#allocation9 + $0x130] sm:$0xff]  ;;  %v2138_v27 = vld [vmem:[#allocation9 + $0x138] sm:$0xff]  ;;  %v2140_v28 = vld [vmem:[#allocation9 + $0x140] sm:$0xff] }
  0x21   :  { %339 = vmatpush.msrb.mxu3 %v2097_v14  ;;  %297 = vmatpush.msra.mxu1 %v2107_v17  ;;  %v2143_v29 = vld [vmem:[#allocation9 + $0x168] sm:$0xff]  ;;  %v2145_v30 = vld [vmem:[#allocation9 + $0x110] sm:$0xff]  ;;  %v2150_v31 = vld [vmem:[#allocation9 + $0x118] sm:$0xff] }
  0x22   :  { %1724 = vmatmul.msk.f32.vlgmr.msrb.gmra.mxu1 %vm121_vm0, %v106_v3  ;;  %278 = vmatpush.msra.mxu0 %v2104_v16  ;;  %v2152_v32 = vld [vmem:[#allocation9 + $0x120] sm:$0xff]  ;;  %v2155_v33 = vld [vmem:[#allocation9 + $0x148] sm:$0xff]  ;;  %v2157_v34 = vld [vmem:[#allocation9 + $0xf0] sm:$0xff] }
  0x23   :  { %320 = vmatpush.msrb.mxu2 %v2109_v18  ;;  %340 = vmatpush.msrb.mxu3 %v2114_v19  ;;  %v2162_v35 = vld [vmem:[#allocation9 + $0xf8] sm:$0xff]  ;;  %v2164_v36 = vld [vmem:[#allocation9 + $0x100] sm:$0xff]  ;;  %v2167_v37 = vld [vmem:[#allocation9 + $0x128] sm:$0xff] }
  0x24   :  { %279 = vmatpush.msra.mxu0 %v2116_v20  ;;  %298 = vmatpush.msra.mxu1 %v2119_v21  ;;  %v2169_v38 = vld [vmem:[#allocation9 + $0xd0] sm:$0xff]  ;;  %v2174_v39 = vld [vmem:[#allocation9 + $0xd8] sm:$0xff]  ;;  %v2176_v40 = vld [vmem:[#allocation9 + $0xe0] sm:$0xff] }
  0x25   :  { %321 = vmatpush.msrb.mxu2 %v2121_v22  ;;  %341 = vmatpush.msrb.mxu3 %v2126_v23  ;;  %v2179_v41 = vld [vmem:[#allocation9 + $0x108] sm:$0xff]  ;;  %v2181_v42 = vld [vmem:[#allocation9 + $0xb0] sm:$0xff]  ;;  %v2186_v43 = vld [vmem:[#allocation9 + $0xb8] sm:$0xff] }
  0x26   :  { %280 = vmatpush.msra.mxu0 %v2128_v24  ;;  %299 = vmatpush.msra.mxu1 %v2131_v25  ;;  %v2188_v44 = vld [vmem:[#allocation9 + $0xc0] sm:$0xff]  ;;  %v2191_v45 = vld [vmem:[#allocation9 + $0xe8] sm:$0xff]  ;;  %v2193_v46 = vld [vmem:[#allocation9 + $0x90] sm:$0xff] }
  0x27   :  { %322 = vmatpush.msrb.mxu2 %v2133_v26  ;;  %342 = vmatpush.msrb.mxu3 %v2138_v27  ;;  %2980 = vst [vmem:[#allocation22_spill] sm:$0xff] %v2193_v46  ;;  %v2198_v47 = vld [vmem:[#allocation9 + $0x98] sm:$0xff]  ;;  %v2200_v48 = vld [vmem:[#allocation9 + $0xa0] sm:$0xff]  ;;  %v2203_v49 = vld [vmem:[#allocation9 + $0xc8] sm:$0xff] }
  0x28   :  { %281 = vmatpush.msra.mxu0 %v2140_v28  ;;  %300 = vmatpush.msra.mxu1 %v2143_v29  ;;  %2981 = vst [vmem:[#allocation23_spill] sm:$0xff] %v2198_v47  ;;  %v2205_v50 = vld [vmem:[#allocation9 + $0x70] sm:$0xff]  ;;  %v2210_v51 = vld [vmem:[#allocation9 + $0x78] sm:$0xff]  ;;  %v2212_v52 = vld [vmem:[#allocation9 + $0x80] sm:$0xff] }
  0x29   :  { %323 = vmatpush.msrb.mxu2 %v2145_v30  ;;  %343 = vmatpush.msrb.mxu3 %v2150_v31  ;;  %2982 = vst [vmem:[#allocation24_spill] sm:$0xff] %v2205_v50  ;;  %v2215_v53 = vld [vmem:[#allocation9 + $0xa8] sm:$0xff]  ;;  %v2217_v54 = vld [vmem:[#allocation9 + $0x50] sm:$0xff]  ;;  %v2222_v55 = vld [vmem:[#allocation9 + $0x58] sm:$0xff] }
  0x2a   :  { %282 = vmatpush.msra.mxu0 %v2152_v32  ;;  %301 = vmatpush.msra.mxu1 %v2155_v33  ;;  %2983 = vst [vmem:[#allocation25_spill] sm:$0xff] %v2210_v51  ;;  %v2224_v56 = vld [vmem:[#allocation9 + $0x60] sm:$0xff]  ;;  %v2227_v57 = vld [vmem:[#allocation9 + $0x88] sm:$0xff]  ;;  %v2229_v58 = vld [vmem:[#allocation9 + $0x30] sm:$0xff] }
  0x2b   :  { %324 = vmatpush.msrb.mxu2 %v2157_v34  ;;  %344 = vmatpush.msrb.mxu3 %v2162_v35  ;;  %2984 = vst [vmem:[#allocation26_spill] sm:$0xff] %v2217_v54  ;;  %v2234_v59 = vld [vmem:[#allocation9 + $0x38] sm:$0xff]  ;;  %v2236_v60 = vld [vmem:[#allocation9 + $0x40] sm:$0xff]  ;;  %v2239_v61 = vld [vmem:[#allocation9 + $0x68] sm:$0xff] }
  0x2c   :  { %283 = vmatpush.msra.mxu0 %v2164_v36  ;;  %302 = vmatpush.msra.mxu1 %v2167_v37  ;;  %2985 = vst [vmem:[#allocation27_spill] sm:$0xff] %v2222_v55  ;;  %v2241_v62 = vld [vmem:[#allocation9 + $0x10] sm:$0xff]  ;;  %v2246_v63 = vld [vmem:[#allocation9 + $0x18] sm:$0xff]  ;;  %v2252_v1 = vld [vmem:[#allocation9 + $0x48] sm:$0xff] }
  0x2d   :  { %325 = vmatpush.msrb.mxu2 %v2169_v38  ;;  %345 = vmatpush.msrb.mxu3 %v2174_v39  ;;  %2986 = vst [vmem:[#allocation28_spill] sm:$0xff] %v2224_v56  ;;  %v209_v0 = vld [vmem:[%s2912_s6] sm:$0x1]  ;;  %v2257_v2 = vld [vmem:[#allocation9 + $0x20] sm:$0xff]  ;;  %v2260_v3 = vld [vmem:[#allocation9 + $0x28] sm:$0xff] }
  0x2e   :  { %284 = vmatpush.msra.mxu0 %v2176_v40  ;;  %303 = vmatpush.msra.mxu1 %v2179_v41  ;;  %2987 = vst [vmem:[#allocation29_spill] sm:$0xff] %v2229_v58  ;;  %v2263_v8 = vld [vmem:[#allocation9] sm:$0xff] }
  0x2f   :  { %326 = vmatpush.msrb.mxu2 %v2181_v42  ;;  %346 = vmatpush.msrb.mxu3 %v2186_v43  ;;  %2988 = vst [vmem:[#allocation30_spill] sm:$0xff] %v2234_v59 }
  0x30   :  { %285 = vmatpush.msra.mxu0 %v2188_v44  ;;  %304 = vmatpush.msra.mxu1 %v2191_v45  ;;  %2989 = vst [vmem:[#allocation31_spill] sm:$0xff] %v2236_v60 }
  0x31   :  { %327 = vmatpush.msrb.mxu2 %v2193_v46  ;;  %347 = vmatpush.msrb.mxu3 %v2198_v47  ;;  %2990 = vst [vmem:[#allocation32_spill] sm:$0xff] %v2239_v61 }
  0x32   :  { %286 = vmatpush.msra.mxu0 %v2200_v48  ;;  %305 = vmatpush.msra.mxu1 %v2203_v49  ;;  %2991 = vst [vmem:[#allocation33_spill] sm:$0xff] %v2241_v62 }
  0x33   :  { %328 = vmatpush.msrb.mxu2 %v2205_v50  ;;  %348 = vmatpush.msrb.mxu3 %v2210_v51  ;;  %2992 = vst [vmem:[#allocation34_spill] sm:$0xff] %v2246_v63 }
  0x34   :  { %287 = vmatpush.msra.mxu0 %v2212_v52  ;;  %306 = vmatpush.msra.mxu1 %v2215_v53  ;;  %2993 = vst [vmem:[#allocation35_spill] sm:$0xff] %v2252_v1 }
  0x35   :  { %329 = vmatpush.msrb.mxu2 %v2217_v54  ;;  %349 = vmatpush.msrb.mxu3 %v2222_v55  ;;  %2994 = vst [vmem:[#allocation36_spill] sm:$0xff] %v2257_v2 }
  0x36   :  { %288 = vmatpush.msra.mxu0 %v2224_v56  ;;  %307 = vmatpush.msra.mxu1 %v2227_v57  ;;  %2995 = vst [vmem:[#allocation37_spill] sm:$0xff] %v2260_v3 }
  0x37   :  { %330 = vmatpush.msrb.mxu2 %v2229_v58  ;;  %350 = vmatpush.msrb.mxu3 %v2234_v59  ;;  %2996 = vst [vmem:[#allocation38_spill] sm:$0xff] %v2263_v8  ;;  %v2266_v59 = vld [vmem:[#allocation9 + $0x8] sm:$0xff] }
  0x38   :  { %289 = vmatpush.msra.mxu0 %v2236_v60  ;;  %308 = vmatpush.msra.mxu1 %v2239_v61  ;;  %2997 = vst [vmem:[#allocation39_spill] sm:$0xff] %v2266_v59 }
  0x39   :  { %331 = vmatpush.msrb.mxu2 %v2241_v62  ;;  %351 = vmatpush.msrb.mxu3 %v2246_v63 }
  0x3a   :  { %332 = vmatmul.f32.vlgmr.msrb.gmra.mxu2 %v209_v0  ;;  %352 = vmatmul.f32.vlgmr.msrb.gmra.mxu3 %v209_v0 }
  0x3b   :  { %309 = vmatpush.msra.mxu1 %v2252_v1  ;;  %290 = vmatpush.msra.mxu0 %v2257_v2 }
  0x3c   :  { %496 = vmatpush.msra.mxu2 %v2072_v4  ;;  %516 = vmatpush.msra.mxu3 %v2074_v5 }
  0x3d   :  { %310 = vmatpush.msra.mxu1 %v2260_v3  ;;  %291 = vmatpush.msra.mxu0 %v2263_v8 }
  0x3e   :  { %497 = vmatpush.msra.mxu2 %v2077_v6  ;;  %292 = vmatmul.f32.vlgmr.msra.gmra.mxu0 %v209_v0 }
  0x3f   :  { %311 = vmatpush.msra.mxu1 %v2266_v59  ;;  %456 = vmatpush.msrb.mxu0 %v2089_v11 }
  0x40   :  { %312 = vmatmul.f32.vlgmr.msra.gmra.mxu1 %v209_v0  ;;  %517 = vmatpush.msra.mxu3 %v2079_v7  ;;  %v2998_v0 = vld [vmem:[#allocation30_spill] sm:$0xff] }
  0x41   :  { %476 = vmatpush.msrb.mxu1 %v2093_v12  ;;  %457 = vmatpush.msrb.mxu0 %v2100_v15 }
  0x42   :  { %498 = vmatpush.msra.mxu2 %v2085_v9  ;;  %518 = vmatpush.msra.mxu3 %v2087_v10 }
  0x43   :  { %477 = vmatpush.msrb.mxu1 %v2107_v17  ;;  %458 = vmatpush.msrb.mxu0 %v2104_v16 }
  0x44   :  { %499 = vmatpush.msra.mxu2 %v2095_v13  ;;  %519 = vmatpush.msra.mxu3 %v2097_v14 }
  0x45   :  { %478 = vmatpush.msrb.mxu1 %v2119_v21  ;;  %459 = vmatpush.msrb.mxu0 %v2116_v20 }
  0x46   :  { %500 = vmatpush.msra.mxu2 %v2109_v18  ;;  %520 = vmatpush.msra.mxu3 %v2114_v19 }
  0x47   :  { %479 = vmatpush.msrb.mxu1 %v2131_v25  ;;  %460 = vmatpush.msrb.mxu0 %v2128_v24 }
  0x48   :  { %501 = vmatpush.msra.mxu2 %v2121_v22  ;;  %521 = vmatpush.msra.mxu3 %v2126_v23 }
  0x49   :  { %480 = vmatpush.msrb.mxu1 %v2143_v29  ;;  %461 = vmatpush.msrb.mxu0 %v2140_v28 }
  0x4a   :  { %502 = vmatpush.msra.mxu2 %v2133_v26  ;;  %522 = vmatpush.msra.mxu3 %v2138_v27 }
  0x4b   :  { %481 = vmatpush.msrb.mxu1 %v2155_v33  ;;  %462 = vmatpush.msrb.mxu0 %v2152_v32 }
  0x4c   :  { %503 = vmatpush.msra.mxu2 %v2145_v30  ;;  %523 = vmatpush.msra.mxu3 %v2150_v31 }
  0x4d   :  { %482 = vmatpush.msrb.mxu1 %v2167_v37  ;;  %463 = vmatpush.msrb.mxu0 %v2164_v36 }
  0x4e   :  { %504 = vmatpush.msra.mxu2 %v2157_v34  ;;  %524 = vmatpush.msra.mxu3 %v2162_v35 }
  0x4f   :  { %483 = vmatpush.msrb.mxu1 %v2179_v41  ;;  %464 = vmatpush.msrb.mxu0 %v2176_v40 }
  0x50   :  { %505 = vmatpush.msra.mxu2 %v2169_v38  ;;  %525 = vmatpush.msra.mxu3 %v2174_v39 }
  0x51   :  { %484 = vmatpush.msrb.mxu1 %v2191_v45  ;;  %465 = vmatpush.msrb.mxu0 %v2188_v44 }
  0x52   :  { %506 = vmatpush.msra.mxu2 %v2181_v42  ;;  %526 = vmatpush.msra.mxu3 %v2186_v43 }
  0x53   :  { %485 = vmatpush.msrb.mxu1 %v2203_v49  ;;  %466 = vmatpush.msrb.mxu0 %v2200_v48 }
  0x54   :  { %507 = vmatpush.msra.mxu2 %v2193_v46  ;;  %527 = vmatpush.msra.mxu3 %v2198_v47 }
  0x55   :  { %486 = vmatpush.msrb.mxu1 %v2215_v53  ;;  %467 = vmatpush.msrb.mxu0 %v2212_v52 }
  0x56   :  { %508 = vmatpush.msra.mxu2 %v2205_v50  ;;  %528 = vmatpush.msra.mxu3 %v2210_v51 }
  0x57   :  { %487 = vmatpush.msrb.mxu1 %v2227_v57  ;;  %468 = vmatpush.msrb.mxu0 %v2224_v56 }
  0x58   :  { %509 = vmatpush.msra.mxu2 %v2217_v54  ;;  %529 = vmatpush.msra.mxu3 %v2222_v55 }
  0x59   :  { %488 = vmatpush.msrb.mxu1 %v2239_v61  ;;  %469 = vmatpush.msrb.mxu0 %v2236_v60 }
  0x5a   :  { %510 = vmatpush.msra.mxu2 %v2229_v58  ;;  %530 = vmatpush.msra.mxu3 %v2998_v0 }
  0x5b   :  { %489 = vmatpush.msrb.mxu1 %v2252_v1  ;;  %470 = vmatpush.msrb.mxu0 %v2257_v2 }
  0x5c   :  { %511 = vmatpush.msra.mxu2 %v2241_v62  ;;  %531 = vmatpush.msra.mxu3 %v2246_v63 }
  0x5d   :  { %490 = vmatpush.msrb.mxu1 %v2260_v3  ;;  %471 = vmatpush.msrb.mxu0 %v2263_v8 }
  0x5e   :  { %673 = vmatpush.msrb.mxu2 %v2072_v4  ;;  %693 = vmatpush.msrb.mxu3 %v2074_v5 }
  0x5f   :  { %491 = vmatpush.msrb.mxu1 %v2266_v59  ;;  %633 = vmatpush.msra.mxu0 %v2089_v11 }
  0x60   :  { %674 = vmatpush.msrb.mxu2 %v2077_v6  ;;  %694 = vmatpush.msrb.mxu3 %v2079_v7 }
  0x61   :  { %653 = vmatpush.msra.mxu1 %v2093_v12  ;;  %634 = vmatpush.msra.mxu0 %v2100_v15 }
  0x62   :  { %675 = vmatpush.msrb.mxu2 %v2085_v9  ;;  %695 = vmatpush.msrb.mxu3 %v2087_v10 }
  0x63   :  { %654 = vmatpush.msra.mxu1 %v2107_v17  ;;  %635 = vmatpush.msra.mxu0 %v2104_v16 }
  0x64   :  { %676 = vmatpush.msrb.mxu2 %v2095_v13  ;;  %696 = vmatpush.msrb.mxu3 %v2097_v14 }
  0x65   :  { %655 = vmatpush.msra.mxu1 %v2119_v21  ;;  %636 = vmatpush.msra.mxu0 %v2116_v20 }
  0x66   :  { %677 = vmatpush.msrb.mxu2 %v2109_v18  ;;  %697 = vmatpush.msrb.mxu3 %v2114_v19 }
  0x67   :  { %656 = vmatpush.msra.mxu1 %v2131_v25  ;;  %637 = vmatpush.msra.mxu0 %v2128_v24 }
  0x68   :  { %678 = vmatpush.msrb.mxu2 %v2121_v22  ;;  %698 = vmatpush.msrb.mxu3 %v2126_v23 }
  0x69   :  { %657 = vmatpush.msra.mxu1 %v2143_v29  ;;  %638 = vmatpush.msra.mxu0 %v2140_v28 }
  0x6a   :  { %679 = vmatpush.msrb.mxu2 %v2133_v26  ;;  %699 = vmatpush.msrb.mxu3 %v2138_v27 }
  0x6b   :  { %658 = vmatpush.msra.mxu1 %v2155_v33  ;;  %639 = vmatpush.msra.mxu0 %v2152_v32 }
  0x6c   :  { %680 = vmatpush.msrb.mxu2 %v2145_v30  ;;  %700 = vmatpush.msrb.mxu3 %v2150_v31 }
  0x6d   :  { %659 = vmatpush.msra.mxu1 %v2167_v37  ;;  %640 = vmatpush.msra.mxu0 %v2164_v36 }
  0x6e   :  { %681 = vmatpush.msrb.mxu2 %v2157_v34  ;;  %701 = vmatpush.msrb.mxu3 %v2162_v35 }
  0x6f   :  { %660 = vmatpush.msra.mxu1 %v2179_v41  ;;  %641 = vmatpush.msra.mxu0 %v2176_v40 }
  0x70   :  { %682 = vmatpush.msrb.mxu2 %v2169_v38  ;;  %702 = vmatpush.msrb.mxu3 %v2174_v39 }
  0x71   :  { %661 = vmatpush.msra.mxu1 %v2191_v45  ;;  %642 = vmatpush.msra.mxu0 %v2188_v44 }
  0x72   :  { %683 = vmatpush.msrb.mxu2 %v2181_v42  ;;  %703 = vmatpush.msrb.mxu3 %v2186_v43 }
  0x73   :  { %662 = vmatpush.msra.mxu1 %v2203_v49  ;;  %643 = vmatpush.msra.mxu0 %v2200_v48 }
  0x74   :  { %684 = vmatpush.msrb.mxu2 %v2193_v46  ;;  %704 = vmatpush.msrb.mxu3 %v2198_v47 }
  0x75   :  { %663 = vmatpush.msra.mxu1 %v2215_v53  ;;  %644 = vmatpush.msra.mxu0 %v2212_v52 }
  0x76   :  { %685 = vmatpush.msrb.mxu2 %v2205_v50  ;;  %705 = vmatpush.msrb.mxu3 %v2210_v51 }
  0x77   :  { %664 = vmatpush.msra.mxu1 %v2227_v57  ;;  %645 = vmatpush.msra.mxu0 %v2224_v56 }
  0x78   :  { %686 = vmatpush.msrb.mxu2 %v2217_v54  ;;  %706 = vmatpush.msrb.mxu3 %v2222_v55  ;;  %v111_v54 = vld [vmem:[#allocation10] sm:$0xf] }
  0x79   :  { %665 = vmatpush.msra.mxu1 %v2239_v61  ;;  %646 = vmatpush.msra.mxu0 %v2236_v60  ;;  %v115_v51 = vperm.slane %v111_v54, 2 }
  0x7a   :  { %687 = vmatpush.msrb.mxu2 %v2229_v58  ;;  %707 = vmatpush.msrb.mxu3 %v2998_v0  ;;  %v116_v58 = vperm.slane %v111_v54, 3 }
  0x7b   :  { %666 = vmatpush.msra.mxu1 %v2252_v1  ;;  %647 = vmatpush.msra.mxu0 %v2257_v2  ;;  %v113_v1 = vperm.slane %v111_v54, 0  ;;  %v114_v2 = vperm.slane %v111_v54, 1 }
  0x7c   :  { %688 = vmatpush.msrb.mxu2 %v2241_v62  ;;  %708 = vmatpush.msrb.mxu3 %v2246_v63 }
  0x7d   :  { %667 = vmatpush.msra.mxu1 %v2260_v3  ;;  %648 = vmatpush.msra.mxu0 %v2263_v8 }
  0x7f   :  { %668 = vmatpush.msra.mxu1 %v2266_v59 }
  0x97   :  { %v142_v60 = vpop.f32.mrf.mxu1 }
  0x98   :  { %v143_v55 = vadd.f32 %v142_v60, %v113_v1 }
  0x9a   :  { %205 = vst [vmem:[#allocation2] sm:$0xff] %v143_v55 }
  0x9e   :  { %v182_v3 = vpop.f32.mrf.mxu2 }
  0x9f   :  { %v162_v50 = vpop.f32.mrf.mxu1  ;;  %v183_v0 = vadd.f32 %v182_v3, %v115_v51  ;;  %v202_v56 = vpop.f32.mrf.mxu3 }
  0xa0   :  { %v163_v61 = vadd.f32 %v162_v50, %v114_v2  ;;  %v203_v8 = vadd.f32 %v202_v56, %v116_v58 }
  0xa1   :  { %207 = vst [vmem:[#allocation2 + $0x10] sm:$0xff] %v183_v0 }
  0xa2   :  { %206 = vst [vmem:[#allocation2 + $0x8] sm:$0xff] %v163_v61 }
  0xa3   :  { %208 = vst [vmem:[#allocation2 + $0x18] sm:$0xff] %v203_v8 }
  0xaa   :  { %v211_v51 = vld [vmem:[#allocation2] ss:$8 sm:$0xf] }
  0xbb   :  { %v293_v62 = vpop.f32.mrf.mxu0 }
  0xbd   :  { %v313_v59 = vpop.f32.mrf.mxu1  ;;  %v333_v63 = vpop.f32.mrf.mxu2 }
  0xbe   :  { %v360_v47 = vrot.slane %v313_v59, 7  ;;  %v361_v46 = vrot.slane %v333_v63, 6  ;;  %v353_v60 = vpop.f32.mrf.mxu3  ;;  %v210_v63 = vld [vmem:[%s2913_s7] sm:$0x1]  ;;  %s1999_s7 = smov [#allocation14]  }
  0xbf   :  { %v362_v55 = vrot.slane %v353_v60, 5  ;;  %s1689_s20 = sshll.u32 %s1999_s7, 4  ;;  %s1690_s20 = int_to_ptr.vmem [resolvable:$true] %s1689_s20 }
  0xc0   :  { %v364_v54 = vsel %vm363_vm1, %v293_v62, %v360_v47 }
  0xc1   :  { %v366_v50 = vsel %vm365_vm2, %v361_v46, %v362_v55 }
  0xc2   :  { %v368_v56 = vsel %vm367_vm3, %v364_v54, %v366_v50 }
  0xc3   :  { %v370_v58 = vadd.f32 %v368_v56, %v211_v51 }
  0xc5   :  { %v371_v61 = vmul.f32 0.5, %v370_v58  ;;  %v376_v1 = vrot.slane %v370_v58, 3 }
  0xc7   :  { %1740 = vtanh.f32 %v371_v61 }
  0xc8   :  { %1742 = vtanh.f32 %v376_v1 }
  0xcd   :  { %v1741_v2 = vpop.eup %1740 }
  0xce   :  { %v373_v3 = vmul.f32 0.5, %v1741_v2  ;;  %v1743_v0 = vpop.eup %1742  ;;  %v568_v2 = vld [vmem:[#allocation2 + $0x2] ss:$8 sm:$0xf] }
  0xd0   :  { %v374_v59 = vadd.f32 0.5, %v373_v3 }
  0xd2   :  { %v380_v8 = vrot.slane %v374_v59, 1  ;;  %v383_v62 = vmul.f32 %v1743_v0, %v374_v59  ;;  %v386_v60 = vrot.slane %v374_v59, 2 }
  0xd4   :  { %v382_v47 = vmul.f32 %v380_v8, %v210_v63 }
  0xd6   :  { %v2405_v46 = vadd.f32 %v383_v62, %v382_v47 }
  0xd8   :  { %1744 = vtanh.f32 %v2405_v46 }
  0xde   :  { %v1745_v55 = vpop.eup %1744 }
  0xdf   :  { %v388_v54 = vmul.f32 %v1745_v55, %v386_v60 }
  0xe1   :  { %389 = vst [vmem:[#allocation3] sm:$0x1] %v388_v54  ;;  %472 = vmatmul.f32.vlgmr.msrb.gmra.mxu0 %v388_v54  ;;  %492 = vmatmul.f32.vlgmr.msrb.gmra.mxu1 %v388_v54 }
  0xe2   :  { %512 = vmatmul.f32.vlgmr.msra.gmra.mxu2 %v388_v54  ;;  %532 = vmatmul.f32.vlgmr.msra.gmra.mxu3 %v388_v54 }
  0xe3   :  { %810 = vmatpush.msrb.mxu0 %v2089_v11  ;;  %830 = vmatpush.msrb.mxu1 %v2093_v12  ;;  %v3005_v11 = vld [vmem:[#allocation31_spill] sm:$0xff] }
  0xe4   :  { %850 = vmatpush.msra.mxu2 %v2072_v4  ;;  %870 = vmatpush.msra.mxu3 %v2074_v5  ;;  %v2999_v4 = vld [vmem:[#allocation22_spill] sm:$0xff]  ;;  %v3000_v5 = vld [vmem:[#allocation23_spill] sm:$0xff] }
  0xe5   :  { %811 = vmatpush.msrb.mxu0 %v2100_v15  ;;  %831 = vmatpush.msrb.mxu1 %v2107_v17  ;;  %v3006_v12 = vld [vmem:[#allocation35_spill] sm:$0xff]  ;;  %v3009_v15 = vld [vmem:[#allocation36_spill] sm:$0xff]  ;;  %v3011_v17 = vld [vmem:[#allocation29_spill] sm:$0xff] }
  0xe6   :  { %851 = vmatpush.msra.mxu2 %v2077_v6  ;;  %871 = vmatpush.msra.mxu3 %v2079_v7  ;;  %v3001_v6 = vld [vmem:[#allocation28_spill] sm:$0xff] }
  0xe7   :  { %812 = vmatpush.msrb.mxu0 %v2104_v16  ;;  %832 = vmatpush.msrb.mxu1 %v2119_v21  ;;  %v3002_v7 = vld [vmem:[#allocation32_spill] sm:$0xff]  ;;  %v3010_v16 = vld [vmem:[#allocation37_spill] sm:$0xff] }
  0xe8   :  { %852 = vmatpush.msra.mxu2 %v2085_v9  ;;  %872 = vmatpush.msra.mxu3 %v2087_v10  ;;  %v3003_v9 = vld [vmem:[#allocation24_spill] sm:$0xff]  ;;  %v3004_v10 = vld [vmem:[#allocation25_spill] sm:$0xff] }
  0xe9   :  { %813 = vmatpush.msrb.mxu0 %v2116_v20  ;;  %833 = vmatpush.msrb.mxu1 %v2131_v25  ;;  %v3014_v20 = vld [vmem:[#allocation39_spill] sm:$0xff]  ;;  %v3015_v21 = vld [vmem:[#allocation33_spill] sm:$0xff] }
  0xea   :  { %853 = vmatpush.msra.mxu2 %v2095_v13  ;;  %873 = vmatpush.msra.mxu3 %v2097_v14  ;;  %v3007_v13 = vld [vmem:[#allocation26_spill] sm:$0xff]  ;;  %v3008_v14 = vld [vmem:[#allocation27_spill] sm:$0xff] }
  0xeb   :  { %814 = vmatpush.msrb.mxu0 %v2128_v24  ;;  %834 = vmatpush.msrb.mxu1 %v2143_v29 }
  0xec   :  { %854 = vmatpush.msra.mxu2 %v2109_v18  ;;  %874 = vmatpush.msra.mxu3 %v2114_v19  ;;  %v3012_v18 = vld [vmem:[#allocation30_spill] sm:$0xff] }
  0xed   :  { %815 = vmatpush.msrb.mxu0 %v2140_v28  ;;  %835 = vmatpush.msrb.mxu1 %v2155_v33  ;;  %v3013_v19 = vld [vmem:[#allocation38_spill] sm:$0xff] }
  0xee   :  { %855 = vmatpush.msra.mxu2 %v2121_v22  ;;  %875 = vmatpush.msra.mxu3 %v2126_v23  ;;  %v3016_v22 = vld [vmem:[#allocation34_spill] sm:$0xff] }
  0xef   :  { %816 = vmatpush.msrb.mxu0 %v2152_v32  ;;  %836 = vmatpush.msrb.mxu1 %v2167_v37  ;;  %v391_v32 = vld [vmem:[#allocation2 + $0x1] ss:$8 sm:$0xf] }
  0xf0   :  { %856 = vmatpush.msra.mxu2 %v2133_v26  ;;  %876 = vmatpush.msra.mxu3 %v2138_v27 }
  0xf1   :  { %817 = vmatpush.msrb.mxu0 %v2164_v36  ;;  %837 = vmatpush.msrb.mxu1 %v2179_v41 }
  0xf2   :  { %857 = vmatpush.msra.mxu2 %v2145_v30  ;;  %877 = vmatpush.msra.mxu3 %v2150_v31 }
  0xf3   :  { %818 = vmatpush.msrb.mxu0 %v2176_v40  ;;  %838 = vmatpush.msrb.mxu1 %v2191_v45 }
  0xf4   :  { %858 = vmatpush.msra.mxu2 %v2157_v34  ;;  %878 = vmatpush.msra.mxu3 %v2162_v35 }
  0xf5   :  { %819 = vmatpush.msrb.mxu0 %v2188_v44  ;;  %839 = vmatpush.msrb.mxu1 %v2203_v49 }
  0xf6   :  { %859 = vmatpush.msra.mxu2 %v2169_v38  ;;  %879 = vmatpush.msra.mxu3 %v2174_v39 }
  0xf7   :  { %820 = vmatpush.msrb.mxu0 %v2200_v48  ;;  %840 = vmatpush.msrb.mxu1 %v2215_v53 }
  0xf8   :  { %860 = vmatpush.msra.mxu2 %v2181_v42  ;;  %880 = vmatpush.msra.mxu3 %v2186_v43 }
  0xf9   :  { %821 = vmatpush.msrb.mxu0 %v2212_v52  ;;  %841 = vmatpush.msrb.mxu1 %v2227_v57 }
  0xfa   :  { %861 = vmatpush.msra.mxu2 %v2999_v4  ;;  %881 = vmatpush.msra.mxu3 %v3000_v5 }
  0xfb   :  { %822 = vmatpush.msrb.mxu0 %v3001_v6  ;;  %842 = vmatpush.msrb.mxu1 %v3002_v7 }
  0xfc   :  { %862 = vmatpush.msra.mxu2 %v3003_v9  ;;  %882 = vmatpush.msra.mxu3 %v3004_v10  ;;  %v2482_v9 = vld [vmem:[#allocation9 + $0x1e0] sm:$0xff]  ;;  %v2484_v10 = vld [vmem:[#allocation9 + $0x1e8] sm:$0xff] }
  0xfd   :  { %823 = vmatpush.msrb.mxu0 %v3005_v11  ;;  %843 = vmatpush.msrb.mxu1 %v3006_v12  ;;  %v2486_v11 = vld [vmem:[#allocation9 + $0x1f0] sm:$0xff]  ;;  %v2490_v12 = vld [vmem:[#allocation9 + $0x1f8] sm:$0xff] }
  0xfe   :  { %863 = vmatpush.msra.mxu2 %v3007_v13  ;;  %883 = vmatpush.msra.mxu3 %v3008_v14  ;;  %v2494_v13 = vld [vmem:[#allocation9 + $0x1c0] sm:$0xff]  ;;  %v2496_v14 = vld [vmem:[#allocation9 + $0x1c8] sm:$0xff] }
  0xff   :  { %824 = vmatpush.msrb.mxu0 %v3009_v15  ;;  %844 = vmatpush.msrb.mxu1 %v3010_v16  ;;  %v2498_v15 = vld [vmem:[#allocation9 + $0x1d0] sm:$0xff]  ;;  %v2502_v16 = vld [vmem:[#allocation9 + $0x1d8] sm:$0xff] }
 0x100   :  { %864 = vmatpush.msra.mxu2 %v3011_v17  ;;  %884 = vmatpush.msra.mxu3 %v3012_v18  ;;  %v2506_v17 = vld [vmem:[#allocation9 + $0x1a0] sm:$0xff]  ;;  %v2508_v18 = vld [vmem:[#allocation9 + $0x1a8] sm:$0xff] }
 0x101   :  { %825 = vmatpush.msrb.mxu0 %v3013_v19  ;;  %845 = vmatpush.msrb.mxu1 %v3014_v20  ;;  %v2510_v19 = vld [vmem:[#allocation9 + $0x1b0] sm:$0xff]  ;;  %v2514_v20 = vld [vmem:[#allocation9 + $0x1b8] sm:$0xff] }
 0x102   :  { %865 = vmatpush.msra.mxu2 %v3015_v21  ;;  %885 = vmatpush.msra.mxu3 %v3016_v22  ;;  %v2518_v21 = vld [vmem:[#allocation9 + $0x180] sm:$0xff]  ;;  %v2520_v22 = vld [vmem:[#allocation9 + $0x188] sm:$0xff] }
 0x15e   :  { %v493_v23 = vpop.f32.mrf.mxu1  ;;  %v473_v29 = vpop.f32.mrf.mxu0 }
 0x15f   :  { %v540_v24 = vrot.slane %v493_v23, 7  ;;  %v2522_v23 = vld [vmem:[#allocation9 + $0x190] sm:$0xff] }
 0x161   :  { %v543_v30 = vsel %vm363_vm1, %v473_v29, %v540_v24  ;;  %v2526_v24 = vld [vmem:[#allocation9 + $0x198] sm:$0xff]  ;;  %v2542_v29 = vld [vmem:[#allocation9 + $0x140] sm:$0xff] }
 0x165   :  { %v513_v25 = vpop.f32.mrf.mxu2  ;;  %v533_v26 = vpop.f32.mrf.mxu3 }
 0x166   :  { %v541_v27 = vrot.slane %v513_v25, 6  ;;  %v542_v28 = vrot.slane %v533_v26, 5  ;;  %v2530_v25 = vld [vmem:[#allocation9 + $0x160] sm:$0xff]  ;;  %v2532_v26 = vld [vmem:[#allocation9 + $0x168] sm:$0xff] }
 0x168   :  { %v544_v31 = vsel %vm365_vm2, %v541_v27, %v542_v28  ;;  %v2534_v27 = vld [vmem:[#allocation9 + $0x170] sm:$0xff]  ;;  %v2538_v28 = vld [vmem:[#allocation9 + $0x178] sm:$0xff] }
 0x169   :  { %v545_v33 = vsel %vm367_vm3, %v543_v30, %v544_v31  ;;  %v2544_v30 = vld [vmem:[#allocation9 + $0x148] sm:$0xff]  ;;  %v2546_v31 = vld [vmem:[#allocation9 + $0x150] sm:$0xff] }
 0x16a   :  { %v547_v34 = vadd.f32 %v545_v33, %v391_v32  ;;  %v2550_v32 = vld [vmem:[#allocation9 + $0x158] sm:$0xff]  ;;  %v2554_v33 = vld [vmem:[#allocation9 + $0x120] sm:$0xff] }
 0x16c   :  { %v548_v35 = vmul.f32 0.5, %v547_v34  ;;  %v553_v36 = vrot.slane %v547_v34, 3  ;;  %v2556_v34 = vld [vmem:[#allocation9 + $0x128] sm:$0xff] }
 0x16e   :  { %1746 = vtanh.f32 %v548_v35  ;;  %v2558_v35 = vld [vmem:[#allocation9 + $0x130] sm:$0xff] }
 0x16f   :  { %1748 = vtanh.f32 %v553_v36  ;;  %v2562_v36 = vld [vmem:[#allocation9 + $0x138] sm:$0xff] }
 0x174   :  { %v1747_v37 = vpop.eup %1746 }
 0x175   :  { %v550_v38 = vmul.f32 0.5, %v1747_v37  ;;  %v1749_v41 = vpop.eup %1748  ;;  %v2566_v37 = vld [vmem:[#allocation9 + $0x100] sm:$0xff] }
 0x177   :  { %v551_v39 = vadd.f32 0.5, %v550_v38  ;;  %v2568_v38 = vld [vmem:[#allocation9 + $0x108] sm:$0xff] }
 0x179   :  { %v557_v40 = vrot.slane %v551_v39, 1  ;;  %v560_v43 = vmul.f32 %v1749_v41, %v551_v39  ;;  %v563_v45 = vrot.slane %v551_v39, 2  ;;  %v2570_v39 = vld [vmem:[#allocation9 + $0x110] sm:$0xff]  ;;  %v2578_v41 = vld [vmem:[#allocation9 + $0xe0] sm:$0xff] }
 0x17b   :  { %v559_v42 = vmul.f32 %v557_v40, %v2405_v46  ;;  %v2574_v40 = vld [vmem:[#allocation9 + $0x118] sm:$0xff] }
 0x17d   :  { %v561_v44 = vadd.f32 %v560_v43, %v559_v42  ;;  %v2580_v42 = vld [vmem:[#allocation9 + $0xe8] sm:$0xff]  ;;  %v2582_v43 = vld [vmem:[#allocation9 + $0xf0] sm:$0xff] }
 0x17f   :  { %1750 = vtanh.f32 %v561_v44 }
 0x185   :  { %v1751_v48 = vpop.eup %1750 }
 0x186   :  { %v565_v49 = vmul.f32 %v1751_v48, %v563_v45  ;;  %v2590_v45 = vld [vmem:[#allocation9 + $0xc0] sm:$0xff]  ;;  %v2592_v48 = vld [vmem:[#allocation9 + $0xc8] sm:$0xff] }
 0x188   :  { %566 = vst [vmem:[#allocation3 + $0x1] sm:$0x1] %v565_v49  ;;  %649 = vmatmul.f32.vlgmr.msra.gmra.mxu0 %v565_v49  ;;  %669 = vmatmul.f32.vlgmr.msra.gmra.mxu1 %v565_v49 }
 0x189   :  { %689 = vmatmul.f32.vlgmr.msrb.gmra.mxu2 %v565_v49  ;;  %709 = vmatmul.f32.vlgmr.msrb.gmra.mxu3 %v565_v49  ;;  %v2594_v49 = vld [vmem:[#allocation9 + $0xd0] sm:$0xff] }
 0x18a   :  { %987 = vmatpush.msra.mxu0 %v2482_v9  ;;  %1007 = vmatpush.msra.mxu1 %v2484_v10 }
 0x18b   :  { %1027 = vmatpush.msrb.mxu2 %v2486_v11  ;;  %1047 = vmatpush.msrb.mxu3 %v2490_v12 }
 0x18c   :  { %988 = vmatpush.msra.mxu0 %v2494_v13  ;;  %1008 = vmatpush.msra.mxu1 %v2496_v14 }
 0x18d   :  { %1028 = vmatpush.msrb.mxu2 %v2498_v15  ;;  %1048 = vmatpush.msrb.mxu3 %v2502_v16 }
 0x18e   :  { %989 = vmatpush.msra.mxu0 %v2506_v17  ;;  %1009 = vmatpush.msra.mxu1 %v2508_v18 }
 0x18f   :  { %1029 = vmatpush.msrb.mxu2 %v2510_v19  ;;  %1049 = vmatpush.msrb.mxu3 %v2514_v20 }
 0x190   :  { %990 = vmatpush.msra.mxu0 %v2518_v21  ;;  %1010 = vmatpush.msra.mxu1 %v2520_v22 }
 0x191   :  { %1030 = vmatpush.msrb.mxu2 %v2522_v23  ;;  %1050 = vmatpush.msrb.mxu3 %v2526_v24 }
 0x192   :  { %991 = vmatpush.msra.mxu0 %v2530_v25  ;;  %1011 = vmatpush.msra.mxu1 %v2532_v26 }
 0x193   :  { %1031 = vmatpush.msrb.mxu2 %v2534_v27  ;;  %1051 = vmatpush.msrb.mxu3 %v2538_v28 }
 0x194   :  { %992 = vmatpush.msra.mxu0 %v2542_v29  ;;  %1012 = vmatpush.msra.mxu1 %v2544_v30 }
 0x195   :  { %1032 = vmatpush.msrb.mxu2 %v2546_v31  ;;  %1052 = vmatpush.msrb.mxu3 %v2550_v32 }
 0x196   :  { %993 = vmatpush.msra.mxu0 %v2554_v33  ;;  %1013 = vmatpush.msra.mxu1 %v2556_v34 }
 0x197   :  { %1033 = vmatpush.msrb.mxu2 %v2558_v35  ;;  %1053 = vmatpush.msrb.mxu3 %v2562_v36 }
 0x198   :  { %994 = vmatpush.msra.mxu0 %v2566_v37  ;;  %1014 = vmatpush.msra.mxu1 %v2568_v38 }
 0x199   :  { %1034 = vmatpush.msrb.mxu2 %v2570_v39  ;;  %1054 = vmatpush.msrb.mxu3 %v2574_v40 }
 0x19a   :  { %995 = vmatpush.msra.mxu0 %v2578_v41  ;;  %1015 = vmatpush.msra.mxu1 %v2580_v42 }
 0x19b   :  { %1035 = vmatpush.msrb.mxu2 %v2582_v43 }
 0x19c   :  { %996 = vmatpush.msra.mxu0 %v2590_v45  ;;  %1016 = vmatpush.msra.mxu1 %v2592_v48 }
 0x19d   :  { %1036 = vmatpush.msrb.mxu2 %v2594_v49 }
 0x205   :  { %v670_v52 = vpop.f32.mrf.mxu1  ;;  %v650_v58 = vpop.f32.mrf.mxu0 }
 0x206   :  { %v717_v53 = vrot.slane %v670_v52, 7  ;;  %v2598_v52 = vld [vmem:[#allocation9 + $0xd8] sm:$0xff] }
 0x208   :  { %v720_v61 = vsel %vm363_vm1, %v650_v58, %v717_v53  ;;  %v2602_v53 = vld [vmem:[#allocation9 + $0xa0] sm:$0xff]  ;;  %v2614_v58 = vld [vmem:[#allocation9 + $0x88] sm:$0xff] }
 0x209   :  { %997 = vmatpush.msra.mxu0 %v2602_v53  ;;  %3018 = vst [vmem:[#allocation23_spill] sm:$0xff] %v2614_v58 }
 0x20c   :  { %v690_v57 = vpop.f32.mrf.mxu2  ;;  %v710_v50 = vpop.f32.mrf.mxu3 }
 0x20d   :  { %v718_v51 = vrot.slane %v690_v57, 6  ;;  %v719_v56 = vrot.slane %v710_v50, 5  ;;  %v2604_v57 = vld [vmem:[#allocation9 + $0xa8] sm:$0xff]  ;;  %v2606_v50 = vld [vmem:[#allocation9 + $0xb0] sm:$0xff] }
 0x20e   :  { %1017 = vmatpush.msra.mxu1 %v2604_v57  ;;  %1037 = vmatpush.msrb.mxu2 %v2606_v50 }
 0x20f   :  { %v721_v1 = vsel %vm365_vm2, %v718_v51, %v719_v56  ;;  %v2610_v51 = vld [vmem:[#allocation9 + $0xb8] sm:$0xff]  ;;  %v2612_v56 = vld [vmem:[#allocation9 + $0x80] sm:$0xff] }
 0x210   :  { %v722_v3 = vsel %vm367_vm3, %v720_v61, %v721_v1  ;;  %3017 = vst [vmem:[#allocation22_spill] sm:$0xff] %v2612_v56  ;;  %v2618_v61 = vld [vmem:[#allocation9 + $0x90] sm:$0xff]  ;;  %v2620_v1 = vld [vmem:[#allocation9 + $0x98] sm:$0xff]  ;;  %998 = vmatpush.msra.mxu0 %v2612_v56  ;;  %1018 = vmatpush.msra.mxu1 %v2614_v58 }
 0x211   :  { %v724_v59 = vadd.f32 %v722_v3, %v568_v2  ;;  %3019 = vst [vmem:[#allocation28_spill] sm:$0xff] %v2618_v61  ;;  %v2622_v2 = vld [vmem:[#allocation9 + $0x60] sm:$0xff]  ;;  %v2626_v3 = vld [vmem:[#allocation9 + $0x68] sm:$0xff]  ;;  %1038 = vmatpush.msrb.mxu2 %v2618_v61 }
 0x212   :  { %3020 = vst [vmem:[#allocation32_spill] sm:$0xff] %v2620_v1  ;;  %999 = vmatpush.msra.mxu0 %v2622_v2  ;;  %1019 = vmatpush.msra.mxu1 %v2626_v3 }
 0x213   :  { %v725_v63 = vmul.f32 0.5, %v724_v59  ;;  %v730_v8 = vrot.slane %v724_v59, 3  ;;  %3021 = vst [vmem:[#allocation24_spill] sm:$0xff] %v2622_v2  ;;  %v2628_v59 = vld [vmem:[#allocation9 + $0x70] sm:$0xff] }
 0x214   :  { %3022 = vst [vmem:[#allocation25_spill] sm:$0xff] %v2626_v3  ;;  %1039 = vmatpush.msrb.mxu2 %v2628_v59 }
 0x215   :  { %1752 = vtanh.f32 %v725_v63  ;;  %3023 = vst [vmem:[#allocation31_spill] sm:$0xff] %v2628_v59  ;;  %v2630_v63 = vld [vmem:[#allocation9 + $0x78] sm:$0xff]  ;;  %v2660_v59 = vld [vmem:[#allocation9 + $0x8] sm:$0xff] }
 0x216   :  { %1754 = vtanh.f32 %v730_v8  ;;  %3024 = vst [vmem:[#allocation35_spill] sm:$0xff] %v2630_v63 }
 0x217   :  { %3034 = vst [vmem:[#allocation34_spill] sm:$0xff] %v2660_v59 }
 0x21b   :  { %v1753_v0 = vpop.eup %1752 }
 0x21c   :  { %v727_v47 = vmul.f32 0.5, %v1753_v0  ;;  %v1755_v60 = vpop.eup %1754  ;;  %v2634_v0 = vld [vmem:[#allocation9 + $0x40] sm:$0xff] }
 0x21d   :  { %3025 = vst [vmem:[#allocation26_spill] sm:$0xff] %v2634_v0  ;;  %1000 = vmatpush.msra.mxu0 %v2634_v0  ;;  %v2666_v0 = vld [vmem:[#allocation9 + $0x18] sm:$0xff] }
 0x21e   :  { %v728_v62 = vadd.f32 0.5, %v727_v47  ;;  %v2636_v47 = vld [vmem:[#allocation9 + $0x48] sm:$0xff]  ;;  %3036 = vst [vmem:[#allocation41_spill] sm:$0xff] %v2666_v0 }
 0x21f   :  { %3026 = vst [vmem:[#allocation27_spill] sm:$0xff] %v2636_v47  ;;  %1020 = vmatpush.msra.mxu1 %v2636_v47  ;;  %v2664_v47 = vld [vmem:[#allocation9 + $0x10] sm:$0xff] }
 0x220   :  { %v734_v46 = vrot.slane %v728_v62, 1  ;;  %v737_v54 = vmul.f32 %v1755_v60, %v728_v62  ;;  %v740_v5 = vrot.slane %v728_v62, 2  ;;  %v2640_v62 = vld [vmem:[#allocation9 + $0x50] sm:$0xff]  ;;  %v2646_v60 = vld [vmem:[#allocation9 + $0x20] sm:$0xff]  ;;  %3035 = vst [vmem:[#allocation40_spill] sm:$0xff] %v2664_v47 }
 0x221   :  { %3027 = vst [vmem:[#allocation36_spill] sm:$0xff] %v2640_v62  ;;  %1040 = vmatpush.msrb.mxu2 %v2640_v62  ;;  %1001 = vmatpush.msra.mxu0 %v2646_v60 }
 0x222   :  { %v736_v55 = vmul.f32 %v734_v46, %v561_v44  ;;  %v2586_v44 = vld [vmem:[#allocation9 + $0xf8] sm:$0xff]  ;;  %3029 = vst [vmem:[#allocation29_spill] sm:$0xff] %v2646_v60 }
 0x223   :  { %1055 = vmatpush.msrb.mxu3 %v2586_v44  ;;  %v2642_v46 = vld [vmem:[#allocation9 + $0x58] sm:$0xff] }
 0x224   :  { %v2479_v4 = vadd.f32 %v737_v54, %v736_v55  ;;  %3028 = vst [vmem:[#allocation37_spill] sm:$0xff] %v2642_v46  ;;  %v2648_v55 = vld [vmem:[#allocation9 + $0x28] sm:$0xff] }
 0x225   :  { %1056 = vmatpush.msrb.mxu3 %v2598_v52  ;;  %3030 = vst [vmem:[#allocation30_spill] sm:$0xff] %v2648_v55  ;;  %1021 = vmatpush.msra.mxu1 %v2648_v55 }
 0x226   :  { %1756 = vtanh.f32 %v2479_v4 }
 0x227   :  { %1057 = vmatpush.msrb.mxu3 %v2610_v51  ;;  %1022 = vmatpush.msra.mxu1 %v2660_v59 }
 0x229   :  { %1058 = vmatpush.msrb.mxu3 %v2620_v1 }
 0x22b   :  { %1059 = vmatpush.msrb.mxu3 %v2630_v63  ;;  %v2658_v63 = vld [vmem:[#allocation9] sm:$0xff] }
 0x22c   :  { %v1757_v6 = vpop.eup %1756  ;;  %3033 = vst [vmem:[#allocation33_spill] sm:$0xff] %v2658_v63  ;;  %1002 = vmatpush.msra.mxu0 %v2658_v63 }
 0x22d   :  { %v742_v7 = vmul.f32 %v1757_v6, %v740_v5  ;;  %v2652_v5 = vld [vmem:[#allocation9 + $0x30] sm:$0xff]  ;;  %v2654_v6 = vld [vmem:[#allocation9 + $0x38] sm:$0xff]  ;;  %1060 = vmatpush.msrb.mxu3 %v2642_v46 }
 0x22e   :  { %3031 = vst [vmem:[#allocation38_spill] sm:$0xff] %v2652_v5  ;;  %1041 = vmatpush.msrb.mxu2 %v2652_v5 }
 0x22f   :  { %743 = vst [vmem:[#allocation3 + $0x2] sm:$0x1] %v742_v7  ;;  %826 = vmatmul.f32.vlgmr.msrb.gmra.mxu0 %v742_v7  ;;  %846 = vmatmul.f32.vlgmr.msrb.gmra.mxu1 %v742_v7 }
 0x230   :  { %866 = vmatmul.f32.vlgmr.msra.gmra.mxu2 %v742_v7  ;;  %886 = vmatmul.f32.vlgmr.msra.gmra.mxu3 %v742_v7  ;;  %3032 = vst [vmem:[#allocation39_spill] sm:$0xff] %v2654_v6 }
 0x231   :  { %1061 = vmatpush.msrb.mxu3 %v2654_v6  ;;  %1042 = vmatpush.msrb.mxu2 %v2664_v47 }
 0x232   :  { %1164 = vmatpush.msrb.mxu0 %v2482_v9  ;;  %1184 = vmatpush.msrb.mxu1 %v2484_v10 }
 0x233   :  { %1062 = vmatpush.msrb.mxu3 %v2666_v0  ;;  %1204 = vmatpush.msra.mxu2 %v2486_v11 }
 0x234   :  { %1165 = vmatpush.msrb.mxu0 %v2494_v13  ;;  %1185 = vmatpush.msrb.mxu1 %v2496_v14 }
 0x235   :  { %1224 = vmatpush.msra.mxu3 %v2490_v12  ;;  %1205 = vmatpush.msra.mxu2 %v2498_v15 }
 0x236   :  { %1166 = vmatpush.msrb.mxu0 %v2506_v17  ;;  %1186 = vmatpush.msrb.mxu1 %v2508_v18 }
 0x237   :  { %1225 = vmatpush.msra.mxu3 %v2502_v16  ;;  %1206 = vmatpush.msra.mxu2 %v2510_v19 }
 0x238   :  { %1167 = vmatpush.msrb.mxu0 %v2518_v21  ;;  %1187 = vmatpush.msrb.mxu1 %v2520_v22 }
 0x239   :  { %1226 = vmatpush.msra.mxu3 %v2514_v20  ;;  %1207 = vmatpush.msra.mxu2 %v2522_v23 }
 0x23a   :  { %1168 = vmatpush.msrb.mxu0 %v2530_v25  ;;  %1188 = vmatpush.msrb.mxu1 %v2532_v26 }
 0x23b   :  { %1227 = vmatpush.msra.mxu3 %v2526_v24  ;;  %1208 = vmatpush.msra.mxu2 %v2534_v27 }
 0x23c   :  { %1169 = vmatpush.msrb.mxu0 %v2542_v29  ;;  %1189 = vmatpush.msrb.mxu1 %v2544_v30 }
 0x23d   :  { %1228 = vmatpush.msra.mxu3 %v2538_v28  ;;  %1209 = vmatpush.msra.mxu2 %v2546_v31 }
 0x23e   :  { %1170 = vmatpush.msrb.mxu0 %v2554_v33  ;;  %1190 = vmatpush.msrb.mxu1 %v2556_v34 }
 0x23f   :  { %1229 = vmatpush.msra.mxu3 %v2550_v32  ;;  %1210 = vmatpush.msra.mxu2 %v2558_v35 }
 0x240   :  { %1171 = vmatpush.msrb.mxu0 %v2566_v37  ;;  %1191 = vmatpush.msrb.mxu1 %v2568_v38 }
 0x241   :  { %1230 = vmatpush.msra.mxu3 %v2562_v36  ;;  %1211 = vmatpush.msra.mxu2 %v2570_v39 }
 0x242   :  { %1172 = vmatpush.msrb.mxu0 %v2578_v41  ;;  %1192 = vmatpush.msrb.mxu1 %v2580_v42 }
 0x243   :  { %1231 = vmatpush.msra.mxu3 %v2574_v40  ;;  %1212 = vmatpush.msra.mxu2 %v2582_v43 }
 0x244   :  { %1173 = vmatpush.msrb.mxu0 %v2590_v45  ;;  %1193 = vmatpush.msrb.mxu1 %v2592_v48 }
 0x245   :  { %1232 = vmatpush.msra.mxu3 %v2586_v44  ;;  %1213 = vmatpush.msra.mxu2 %v2594_v49 }
 0x246   :  { %1174 = vmatpush.msrb.mxu0 %v2602_v53  ;;  %1194 = vmatpush.msrb.mxu1 %v2604_v57 }
 0x247   :  { %1233 = vmatpush.msra.mxu3 %v2598_v52  ;;  %1214 = vmatpush.msra.mxu2 %v2606_v50 }
 0x248   :  { %1175 = vmatpush.msrb.mxu0 %v2612_v56  ;;  %1195 = vmatpush.msrb.mxu1 %v2614_v58  ;;  %v3045_v56 = vld [vmem:[#allocation36_spill] sm:$0xff]  ;;  %v3046_v58 = vld [vmem:[#allocation37_spill] sm:$0xff] }
 0x249   :  { %1234 = vmatpush.msra.mxu3 %v2610_v51  ;;  %1215 = vmatpush.msra.mxu2 %v2618_v61 }
 0x2ac   :  { %v847_v8 = vpop.f32.mrf.mxu1  ;;  %v827_v1 = vpop.f32.mrf.mxu0 }
 0x2ad   :  { %v894_v54 = vrot.slane %v847_v8, 7 }
 0x2af   :  { %v897_v46 = vsel %vm363_vm1, %v827_v1, %v894_v54 }
 0x2b3   :  { %v867_v7 = vpop.f32.mrf.mxu2  ;;  %v887_v3 = vpop.f32.mrf.mxu3 }
 0x2b4   :  { %v895_v2 = vrot.slane %v867_v7, 6  ;;  %v896_v8 = vrot.slane %v887_v3, 5  ;;  %v745_v3 = vld [vmem:[#allocation2 + $0x3] ss:$8 sm:$0xf] }
 0x2b6   :  { %v898_v62 = vsel %vm365_vm2, %v895_v2, %v896_v8 }
 0x2b7   :  { %v899_v7 = vsel %vm367_vm3, %v897_v46, %v898_v62 }
 0x2b8   :  { %v901_v55 = vadd.f32 %v899_v7, %v745_v3 }
 0x2ba   :  { %v902_v1 = vmul.f32 0.5, %v901_v55  ;;  %v907_v2 = vrot.slane %v901_v55, 3 }
 0x2bc   :  { %1758 = vtanh.f32 %v902_v1 }
 0x2bd   :  { %1760 = vtanh.f32 %v907_v2  ;;  %v3039_v2 = vld [vmem:[#allocation24_spill] sm:$0xff] }
 0x2be   :  { %1176 = vmatpush.msrb.mxu0 %v3039_v2  ;;  %v3047_v2 = vld [vmem:[#allocation30_spill] sm:$0xff] }
 0x2c2   :  { %v1759_v62 = vpop.eup %1758 }
 0x2c3   :  { %v904_v46 = vmul.f32 0.5, %v1759_v62  ;;  %v1761_v8 = vpop.eup %1760  ;;  %v3040_v62 = vld [vmem:[#allocation25_spill] sm:$0xff] }
 0x2c4   :  { %1196 = vmatpush.msrb.mxu1 %v3040_v62 }
 0x2c5   :  { %v905_v55 = vadd.f32 0.5, %v904_v46  ;;  %v3041_v46 = vld [vmem:[#allocation31_spill] sm:$0xff] }
 0x2c6   :  { %1216 = vmatpush.msra.mxu2 %v3041_v46 }
 0x2c7   :  { %v911_v54 = vrot.slane %v905_v55, 1  ;;  %v914_v7 = vmul.f32 %v1761_v8, %v905_v55  ;;  %v917_v8 = vrot.slane %v905_v55, 2  ;;  %v3049_v55 = vld [vmem:[#allocation23_spill] sm:$0xff] }
 0x2c8   :  { %1217 = vmatpush.msra.mxu2 %v3045_v56 }
 0x2c9   :  { %v913_v3 = vmul.f32 %v911_v54, %v2479_v4  ;;  %v3038_v4 = vld [vmem:[#allocation32_spill] sm:$0xff]  ;;  %v3042_v54 = vld [vmem:[#allocation35_spill] sm:$0xff] }
 0x2ca   :  { %1235 = vmatpush.msra.mxu3 %v3038_v4  ;;  %1218 = vmatpush.msra.mxu2 %v2652_v5 }
 0x2cb   :  { %v2716_v1 = vadd.f32 %v914_v7, %v913_v3  ;;  %v3043_v3 = vld [vmem:[#allocation26_spill] sm:$0xff]  ;;  %v3044_v7 = vld [vmem:[#allocation27_spill] sm:$0xff] }
 0x2cc   :  { %1236 = vmatpush.msra.mxu3 %v3042_v54  ;;  %1177 = vmatpush.msrb.mxu0 %v3043_v3 }
 0x2cd   :  { %3037 = vst [vmem:[#allocation42_spill] sm:$0xff] %v2716_v1  ;;  %1762 = vtanh.f32 %v2716_v1  ;;  %1197 = vmatpush.msrb.mxu1 %v3044_v7  ;;  %1219 = vmatpush.msra.mxu2 %v2664_v47 }
 0x2ce   :  { %1237 = vmatpush.msra.mxu3 %v3046_v58  ;;  %1178 = vmatpush.msrb.mxu0 %v2646_v60 }
 0x2cf   :  { %1198 = vmatpush.msrb.mxu1 %v3047_v2 }
 0x2d0   :  { %1238 = vmatpush.msra.mxu3 %v2654_v6  ;;  %1179 = vmatpush.msrb.mxu0 %v2658_v63 }
 0x2d1   :  { %1199 = vmatpush.msrb.mxu1 %v2660_v59 }
 0x2d2   :  { %1239 = vmatpush.msra.mxu3 %v2666_v0 }
 0x2d3   :  { %v1763_v1 = vpop.eup %1762 }
 0x2d4   :  { %v919_v61 = vmul.f32 %v1763_v1, %v917_v8  ;;  %v3050_v1 = vld [vmem:[#allocation28_spill] sm:$0xff] }
 0x2d5   :  { %v3051_v8 = vld [vmem:[#allocation24_spill] sm:$0xff] }
 0x2d6   :  { %920 = vst [vmem:[#allocation3 + $0x3] sm:$0x1] %v919_v61  ;;  %1003 = vmatmul.f32.vlgmr.msra.gmra.mxu0 %v919_v61  ;;  %1023 = vmatmul.f32.vlgmr.msra.gmra.mxu1 %v919_v61 }
 0x2d7   :  { %1043 = vmatmul.f32.vlgmr.msrb.gmra.mxu2 %v919_v61  ;;  %1063 = vmatmul.f32.vlgmr.msrb.gmra.mxu3 %v919_v61  ;;  %v3048_v61 = vld [vmem:[#allocation22_spill] sm:$0xff] }
 0x2d8   :  { %1341 = vmatpush.msra.mxu0 %v2482_v9  ;;  %1361 = vmatpush.msra.mxu1 %v2484_v10 }
 0x2d9   :  { %1381 = vmatpush.msrb.mxu2 %v2486_v11  ;;  %1401 = vmatpush.msrb.mxu3 %v2490_v12 }
 0x2da   :  { %1342 = vmatpush.msra.mxu0 %v2494_v13  ;;  %1362 = vmatpush.msra.mxu1 %v2496_v14 }
 0x2db   :  { %1382 = vmatpush.msrb.mxu2 %v2498_v15  ;;  %1402 = vmatpush.msrb.mxu3 %v2502_v16 }
 0x2dc   :  { %1343 = vmatpush.msra.mxu0 %v2506_v17  ;;  %1363 = vmatpush.msra.mxu1 %v2508_v18 }
 0x2dd   :  { %1383 = vmatpush.msrb.mxu2 %v2510_v19  ;;  %1403 = vmatpush.msrb.mxu3 %v2514_v20 }
 0x2de   :  { %1344 = vmatpush.msra.mxu0 %v2518_v21  ;;  %1364 = vmatpush.msra.mxu1 %v2520_v22 }
 0x2df   :  { %1384 = vmatpush.msrb.mxu2 %v2522_v23  ;;  %1404 = vmatpush.msrb.mxu3 %v2526_v24 }
 0x2e0   :  { %1345 = vmatpush.msra.mxu0 %v2530_v25  ;;  %1365 = vmatpush.msra.mxu1 %v2532_v26 }
 0x2e1   :  { %1385 = vmatpush.msrb.mxu2 %v2534_v27  ;;  %1405 = vmatpush.msrb.mxu3 %v2538_v28 }
 0x2e2   :  { %1346 = vmatpush.msra.mxu0 %v2542_v29  ;;  %1366 = vmatpush.msra.mxu1 %v2544_v30 }
 0x2e3   :  { %1386 = vmatpush.msrb.mxu2 %v2546_v31  ;;  %1406 = vmatpush.msrb.mxu3 %v2550_v32 }
 0x2e4   :  { %1347 = vmatpush.msra.mxu0 %v2554_v33  ;;  %1367 = vmatpush.msra.mxu1 %v2556_v34 }
 0x2e5   :  { %1387 = vmatpush.msrb.mxu2 %v2558_v35  ;;  %1407 = vmatpush.msrb.mxu3 %v2562_v36 }
 0x2e6   :  { %1348 = vmatpush.msra.mxu0 %v2566_v37  ;;  %1368 = vmatpush.msra.mxu1 %v2568_v38 }
 0x2e7   :  { %1388 = vmatpush.msrb.mxu2 %v2570_v39  ;;  %1408 = vmatpush.msrb.mxu3 %v2574_v40 }
 0x2e8   :  { %1349 = vmatpush.msra.mxu0 %v2578_v41  ;;  %1369 = vmatpush.msra.mxu1 %v2580_v42 }
 0x2e9   :  { %1389 = vmatpush.msrb.mxu2 %v2582_v43  ;;  %1409 = vmatpush.msrb.mxu3 %v2586_v44 }
 0x2ea   :  { %1350 = vmatpush.msra.mxu0 %v2590_v45  ;;  %1370 = vmatpush.msra.mxu1 %v2592_v48 }
 0x2eb   :  { %1390 = vmatpush.msrb.mxu2 %v2594_v49  ;;  %1410 = vmatpush.msrb.mxu3 %v2598_v52 }
 0x2ec   :  { %1351 = vmatpush.msra.mxu0 %v2602_v53  ;;  %1371 = vmatpush.msra.mxu1 %v2604_v57 }
 0x2ed   :  { %1391 = vmatpush.msrb.mxu2 %v2606_v50  ;;  %1411 = vmatpush.msrb.mxu3 %v2610_v51 }
 0x2ee   :  { %1352 = vmatpush.msra.mxu0 %v3048_v61  ;;  %1372 = vmatpush.msra.mxu1 %v3049_v55 }
 0x2ef   :  { %1392 = vmatpush.msrb.mxu2 %v3050_v1  ;;  %1412 = vmatpush.msrb.mxu3 %v3038_v4 }
 0x2f0   :  { %1353 = vmatpush.msra.mxu0 %v3051_v8  ;;  %1373 = vmatpush.msra.mxu1 %v3040_v62 }
 0x2f1   :  { %1393 = vmatpush.msrb.mxu2 %v3041_v46  ;;  %1413 = vmatpush.msrb.mxu3 %v3042_v54 }
 0x2f2   :  { %1354 = vmatpush.msra.mxu0 %v3043_v3  ;;  %1374 = vmatpush.msra.mxu1 %v3044_v7 }
 0x2f3   :  { %1394 = vmatpush.msrb.mxu2 %v3045_v56  ;;  %1414 = vmatpush.msrb.mxu3 %v3046_v58 }
 0x2f4   :  { %1355 = vmatpush.msra.mxu0 %v2646_v60  ;;  %1375 = vmatpush.msra.mxu1 %v3047_v2 }
 0x2f5   :  { %1395 = vmatpush.msrb.mxu2 %v2652_v5  ;;  %1415 = vmatpush.msrb.mxu3 %v2654_v6  ;;  %v922_v6 = vld [vmem:[#allocation2 + $0x4] ss:$8 sm:$0xf] }
 0x2f6   :  { %1356 = vmatpush.msra.mxu0 %v2658_v63  ;;  %1376 = vmatpush.msra.mxu1 %v2660_v59 }
 0x2f7   :  { %1396 = vmatpush.msrb.mxu2 %v2664_v47  ;;  %1416 = vmatpush.msrb.mxu3 %v2666_v0 }
 0x353   :  { %v1024_v7 = vpop.f32.mrf.mxu1  ;;  %v1004_v46 = vpop.f32.mrf.mxu0 }
 0x354   :  { %v1071_v56 = vrot.slane %v1024_v7, 7 }
 0x356   :  { %v1074_v2 = vsel %vm363_vm1, %v1004_v46, %v1071_v56 }
 0x35a   :  { %v1044_v3 = vpop.f32.mrf.mxu2  ;;  %v1064_v58 = vpop.f32.mrf.mxu3 }
 0x35b   :  { %v1072_v54 = vrot.slane %v1044_v3, 6  ;;  %v1073_v60 = vrot.slane %v1064_v58, 5  ;;  %v3052_v3 = vld [vmem:[#allocation42_spill] sm:$0xff] }
 0x35d   :  { %v1075_v5 = vsel %vm365_vm2, %v1072_v54, %v1073_v60 }
 0x35e   :  { %v1076_v63 = vsel %vm367_vm3, %v1074_v2, %v1075_v5 }
 0x35f   :  { %v1078_v62 = vadd.f32 %v1076_v63, %v922_v6 }
 0x361   :  { %v1079_v59 = vmul.f32 0.5, %v1078_v62  ;;  %v1084_v47 = vrot.slane %v1078_v62, 3 }
 0x363   :  { %1764 = vtanh.f32 %v1079_v59 }
 0x364   :  { %1766 = vtanh.f32 %v1084_v47 }
 0x369   :  { %v1765_v8 = vpop.eup %1764 }
 0x36a   :  { %v1081_v0 = vmul.f32 0.5, %v1765_v8  ;;  %v1767_v1 = vpop.eup %1766 }
 0x36c   :  { %v1082_v7 = vadd.f32 0.5, %v1081_v0 }
 0x36e   :  { %v1088_v4 = vrot.slane %v1082_v7, 1  ;;  %v1091_v55 = vmul.f32 %v1767_v1, %v1082_v7  ;;  %v1094_v56 = vrot.slane %v1082_v7, 2 }
 0x370   :  { %v1090_v58 = vmul.f32 %v1088_v4, %v3052_v3 }
 0x372   :  { %v2813_v61 = vadd.f32 %v1091_v55, %v1090_v58 }
 0x374   :  { %1768 = vtanh.f32 %v2813_v61 }
 0x37a   :  { %v1769_v60 = vpop.eup %1768 }
 0x37b   :  { %v1096_v5 = vmul.f32 %v1769_v60, %v1094_v56 }
 0x37d   :  { %1097 = vst [vmem:[#allocation3 + $0x4] sm:$0x1] %v1096_v5  ;;  %1180 = vmatmul.f32.vlgmr.msrb.gmra.mxu0 %v1096_v5  ;;  %1200 = vmatmul.f32.vlgmr.msrb.gmra.mxu1 %v1096_v5 }
 0x37e   :  { %1220 = vmatmul.f32.vlgmr.msra.gmra.mxu2 %v1096_v5  ;;  %1240 = vmatmul.f32.vlgmr.msra.gmra.mxu3 %v1096_v5 }
 0x37f   :  { %1518 = vmatpush.msrb.mxu0 %v2482_v9  ;;  %1538 = vmatpush.msrb.mxu1 %v2484_v10  ;;  %v3053_v9 = vld [vmem:[#allocation22_spill] sm:$0xff]  ;;  %v3054_v10 = vld [vmem:[#allocation23_spill] sm:$0xff] }
 0x380   :  { %1558 = vmatpush.msra.mxu2 %v2486_v11  ;;  %1578 = vmatpush.msra.mxu3 %v2490_v12  ;;  %v3055_v11 = vld [vmem:[#allocation28_spill] sm:$0xff] }
 0x381   :  { %1519 = vmatpush.msrb.mxu0 %v2494_v13  ;;  %1539 = vmatpush.msrb.mxu1 %v2496_v14  ;;  %v3056_v12 = vld [vmem:[#allocation32_spill] sm:$0xff]  ;;  %v3058_v14 = vld [vmem:[#allocation25_spill] sm:$0xff] }
 0x382   :  { %1559 = vmatpush.msra.mxu2 %v2498_v15  ;;  %1579 = vmatpush.msra.mxu3 %v2502_v16  ;;  %v3057_v13 = vld [vmem:[#allocation24_spill] sm:$0xff]  ;;  %v3059_v15 = vld [vmem:[#allocation31_spill] sm:$0xff] }
 0x383   :  { %1520 = vmatpush.msrb.mxu0 %v2506_v17  ;;  %1540 = vmatpush.msrb.mxu1 %v2508_v18  ;;  %v3060_v16 = vld [vmem:[#allocation35_spill] sm:$0xff]  ;;  %v3061_v17 = vld [vmem:[#allocation26_spill] sm:$0xff] }
 0x384   :  { %1560 = vmatpush.msra.mxu2 %v2510_v19  ;;  %1580 = vmatpush.msra.mxu3 %v2514_v20  ;;  %v3062_v18 = vld [vmem:[#allocation27_spill] sm:$0xff]  ;;  %v3063_v19 = vld [vmem:[#allocation36_spill] sm:$0xff]  ;;  %v3064_v20 = vld [vmem:[#allocation37_spill] sm:$0xff] }
 0x385   :  { %1521 = vmatpush.msrb.mxu0 %v2518_v21  ;;  %1541 = vmatpush.msrb.mxu1 %v2520_v22  ;;  %v3065_v21 = vld [vmem:[#allocation29_spill] sm:$0xff]  ;;  %v3066_v22 = vld [vmem:[#allocation30_spill] sm:$0xff] }
 0x386   :  { %1561 = vmatpush.msra.mxu2 %v2522_v23  ;;  %1581 = vmatpush.msra.mxu3 %v2526_v24  ;;  %v3067_v23 = vld [vmem:[#allocation38_spill] sm:$0xff]  ;;  %v3068_v24 = vld [vmem:[#allocation39_spill] sm:$0xff] }
 0x387   :  { %1522 = vmatpush.msrb.mxu0 %v2530_v25  ;;  %1542 = vmatpush.msrb.mxu1 %v2532_v26  ;;  %v3069_v25 = vld [vmem:[#allocation33_spill] sm:$0xff]  ;;  %v3070_v26 = vld [vmem:[#allocation34_spill] sm:$0xff] }
 0x388   :  { %1562 = vmatpush.msra.mxu2 %v2534_v27  ;;  %1582 = vmatpush.msra.mxu3 %v2538_v28  ;;  %v3071_v27 = vld [vmem:[#allocation40_spill] sm:$0xff]  ;;  %v3072_v28 = vld [vmem:[#allocation41_spill] sm:$0xff] }
 0x389   :  { %1523 = vmatpush.msrb.mxu0 %v2542_v29  ;;  %1543 = vmatpush.msrb.mxu1 %v2544_v30 }
 0x38a   :  { %1563 = vmatpush.msra.mxu2 %v2546_v31  ;;  %1583 = vmatpush.msra.mxu3 %v2550_v32 }
 0x38b   :  { %1524 = vmatpush.msrb.mxu0 %v2554_v33  ;;  %1544 = vmatpush.msrb.mxu1 %v2556_v34 }
 0x38c   :  { %1564 = vmatpush.msra.mxu2 %v2558_v35  ;;  %1584 = vmatpush.msra.mxu3 %v2562_v36 }
 0x38d   :  { %1525 = vmatpush.msrb.mxu0 %v2566_v37  ;;  %1545 = vmatpush.msrb.mxu1 %v2568_v38  ;;  %v1099_v38 = vld [vmem:[#allocation2 + $0x5] ss:$8 sm:$0xf] }
 0x38e   :  { %1565 = vmatpush.msra.mxu2 %v2570_v39  ;;  %1585 = vmatpush.msra.mxu3 %v2574_v40 }
 0x38f   :  { %1526 = vmatpush.msrb.mxu0 %v2578_v41  ;;  %1546 = vmatpush.msrb.mxu1 %v2580_v42 }
 0x390   :  { %1566 = vmatpush.msra.mxu2 %v2582_v43  ;;  %1586 = vmatpush.msra.mxu3 %v2586_v44 }
 0x391   :  { %1527 = vmatpush.msrb.mxu0 %v2590_v45  ;;  %1547 = vmatpush.msrb.mxu1 %v2592_v48 }
 0x392   :  { %1567 = vmatpush.msra.mxu2 %v2594_v49  ;;  %1587 = vmatpush.msra.mxu3 %v2598_v52 }
 0x393   :  { %1528 = vmatpush.msrb.mxu0 %v2602_v53  ;;  %1548 = vmatpush.msrb.mxu1 %v2604_v57 }
 0x394   :  { %1568 = vmatpush.msra.mxu2 %v2606_v50  ;;  %1588 = vmatpush.msra.mxu3 %v2610_v51 }
 0x395   :  { %1529 = vmatpush.msrb.mxu0 %v3053_v9  ;;  %1549 = vmatpush.msrb.mxu1 %v3054_v10 }
 0x396   :  { %1569 = vmatpush.msra.mxu2 %v3055_v11  ;;  %1589 = vmatpush.msra.mxu3 %v3056_v12 }
 0x397   :  { %1530 = vmatpush.msrb.mxu0 %v3057_v13  ;;  %1550 = vmatpush.msrb.mxu1 %v3058_v14 }
 0x398   :  { %1570 = vmatpush.msra.mxu2 %v3059_v15  ;;  %1590 = vmatpush.msra.mxu3 %v3060_v16  ;;  %v1645_v15 = vld [vmem:[#allocation12 + $0x78] sm:$0xff]  ;;  %v1644_v16 = vld [vmem:[#allocation12 + $0x70] sm:$0xff] }
 0x399   :  { %1531 = vmatpush.msrb.mxu0 %v3061_v17  ;;  %1551 = vmatpush.msrb.mxu1 %v3062_v18  ;;  %v1643_v17 = vld [vmem:[#allocation12 + $0x68] sm:$0xff]  ;;  %v1642_v18 = vld [vmem:[#allocation12 + $0x60] sm:$0xff] }
 0x39a   :  { %1571 = vmatpush.msra.mxu2 %v3063_v19  ;;  %1591 = vmatpush.msra.mxu3 %v3064_v20  ;;  %v1641_v19 = vld [vmem:[#allocation12 + $0x58] sm:$0xff]  ;;  %v1640_v20 = vld [vmem:[#allocation12 + $0x50] sm:$0xff] }
 0x39b   :  { %1532 = vmatpush.msrb.mxu0 %v3065_v21  ;;  %1552 = vmatpush.msrb.mxu1 %v3066_v22  ;;  %v1639_v21 = vld [vmem:[#allocation12 + $0x48] sm:$0xff]  ;;  %v1638_v22 = vld [vmem:[#allocation12 + $0x40] sm:$0xff] }
 0x39c   :  { %1572 = vmatpush.msra.mxu2 %v3067_v23  ;;  %1592 = vmatpush.msra.mxu3 %v3068_v24  ;;  %v1637_v24 = vld [vmem:[#allocation12 + $0x38] sm:$0xff] }
 0x39d   :  { %1533 = vmatpush.msrb.mxu0 %v3069_v25  ;;  %1553 = vmatpush.msrb.mxu1 %v3070_v26  ;;  %v1636_v25 = vld [vmem:[#allocation12 + $0x30] sm:$0xff] }
 0x39e   :  { %1573 = vmatpush.msra.mxu2 %v3071_v27  ;;  %1593 = vmatpush.msra.mxu3 %v3072_v28 }
 0x3fa   :  { %v1201_v29 = vpop.f32.mrf.mxu1  ;;  %v1181_v35 = vpop.f32.mrf.mxu0 }
 0x3fb   :  { %v1248_v30 = vrot.slane %v1201_v29, 7  ;;  %v1635_v29 = vld [vmem:[#allocation12 + $0x28] sm:$0xff] }
 0x3fd   :  { %v1251_v36 = vsel %vm363_vm1, %v1181_v35, %v1248_v30 }
 0x401   :  { %v1221_v31 = vpop.f32.mrf.mxu2  ;;  %v1241_v32 = vpop.f32.mrf.mxu3 }
 0x402   :  { %v1249_v33 = vrot.slane %v1221_v31, 6  ;;  %v1250_v34 = vrot.slane %v1241_v32, 5 }
 0x404   :  { %v1252_v37 = vsel %vm365_vm2, %v1249_v33, %v1250_v34  ;;  %v1634_v33 = vld [vmem:[#allocation12 + $0x20] sm:$0xff] }
 0x405   :  { %v1253_v39 = vsel %vm367_vm3, %v1251_v36, %v1252_v37  ;;  %v1453_v36 = vld [vmem:[#allocation2 + $0x7] ss:$8 sm:$0xf] }
 0x406   :  { %v1255_v40 = vadd.f32 %v1253_v39, %v1099_v38  ;;  %v1633_v38 = vld [vmem:[#allocation12 + $0x18] sm:$0xff]  ;;  %v1632_v39 = vld [vmem:[#allocation12 + $0x10] sm:$0xff] }
 0x408   :  { %v1256_v41 = vmul.f32 0.5, %v1255_v40  ;;  %v1261_v42 = vrot.slane %v1255_v40, 3 }
 0x40a   :  { %1770 = vtanh.f32 %v1256_v41  ;;  %v1631_v41 = vld [vmem:[#allocation12 + $0x8] sm:$0xff] }
 0x40b   :  { %1772 = vtanh.f32 %v1261_v42 }
 0x410   :  { %v1771_v43 = vpop.eup %1770 }
 0x411   :  { %v1258_v44 = vmul.f32 0.5, %v1771_v43  ;;  %v1773_v49 = vpop.eup %1772  ;;  %v1630_v43 = vld [vmem:[#allocation12] sm:$0xff] }
 0x413   :  { %v1259_v45 = vadd.f32 0.5, %v1258_v44 }
 0x415   :  { %v1265_v48 = vrot.slane %v1259_v45, 1  ;;  %v1268_v53 = vmul.f32 %v1773_v49, %v1259_v45  ;;  %v1271_v50 = vrot.slane %v1259_v45, 2 }
 0x417   :  { %v1267_v52 = vmul.f32 %v1265_v48, %v2813_v61  ;;  %v1276_v61 = vld [vmem:[#allocation2 + $0x6] ss:$8 sm:$0xf] }
 0x419   :  { %v1269_v57 = vadd.f32 %v1268_v53, %v1267_v52 }
 0x41b   :  { %1774 = vtanh.f32 %v1269_v57 }
 0x421   :  { %v1775_v51 = vpop.eup %1774 }
 0x422   :  { %v1273_v59 = vmul.f32 %v1775_v51, %v1271_v50 }
 0x424   :  { %1274 = vst [vmem:[#allocation3 + $0x5] sm:$0x1] %v1273_v59  ;;  %1357 = vmatmul.f32.vlgmr.msra.gmra.mxu0 %v1273_v59  ;;  %1377 = vmatmul.f32.vlgmr.msra.gmra.mxu1 %v1273_v59 }
 0x425   :  { %1397 = vmatmul.f32.vlgmr.msrb.gmra.mxu2 %v1273_v59  ;;  %1417 = vmatmul.f32.vlgmr.msrb.gmra.mxu3 %v1273_v59 }
 0x426   :  { %1650 = vmatpush.msra.mxu0 %v1645_v15 }
 0x428   :  { %1651 = vmatpush.msra.mxu0 %v1644_v16 }
 0x42a   :  { %1652 = vmatpush.msra.mxu0 %v1643_v17 }
 0x42c   :  { %1653 = vmatpush.msra.mxu0 %v1642_v18 }
 0x42e   :  { %1654 = vmatpush.msra.mxu0 %v1641_v19 }
 0x430   :  { %1655 = vmatpush.msra.mxu0 %v1640_v20 }
 0x432   :  { %1656 = vmatpush.msra.mxu0 %v1639_v21 }
 0x434   :  { %1657 = vmatpush.msra.mxu0 %v1638_v22 }
 0x436   :  { %1658 = vmatpush.msra.mxu0 %v1637_v24 }
 0x438   :  { %1659 = vmatpush.msra.mxu0 %v1636_v25 }
 0x43a   :  { %1660 = vmatpush.msra.mxu0 %v1635_v29 }
 0x43c   :  { %1661 = vmatpush.msra.mxu0 %v1634_v33 }
 0x43e   :  { %1662 = vmatpush.msra.mxu0 %v1633_v38 }
 0x440   :  { %1663 = vmatpush.msra.mxu0 %v1632_v39 }
 0x442   :  { %1664 = vmatpush.msra.mxu0 %v1631_v41 }
 0x444   :  { %1665 = vmatpush.msra.mxu0 %v1630_v43 }
 0x4a1   :  { %v1378_v63 = vpop.f32.mrf.mxu1  ;;  %v1358_v62 = vpop.f32.mrf.mxu0 }
 0x4a2   :  { %v1425_v0 = vrot.slane %v1378_v63, 7 }
 0x4a4   :  { %v1428_v46 = vsel %vm363_vm1, %v1358_v62, %v1425_v0 }
 0x4a8   :  { %v1398_v47 = vpop.f32.mrf.mxu2  ;;  %v1418_v6 = vpop.f32.mrf.mxu3 }
 0x4a9   :  { %v1426_v4 = vrot.slane %v1398_v47, 6  ;;  %v1427_v2 = vrot.slane %v1418_v6, 5  ;;  %v1739_v6 = vld [vmem:[%s2911_s5] ss:$0 sm:$0xff] }
 0x4ab   :  { %v1429_v54 = vsel %vm365_vm2, %v1426_v4, %v1427_v2 }
 0x4ac   :  { %v1430_v55 = vsel %vm367_vm3, %v1428_v46, %v1429_v54 }
 0x4ad   :  { %v1432_v1 = vadd.f32 %v1430_v55, %v1276_v61 }
 0x4af   :  { %v1433_v8 = vmul.f32 0.5, %v1432_v1  ;;  %v1438_v7 = vrot.slane %v1432_v1, 3 }
 0x4b1   :  { %1776 = vtanh.f32 %v1433_v8 }
 0x4b2   :  { %1778 = vtanh.f32 %v1438_v7 }
 0x4b7   :  { %v1777_v3 = vpop.eup %1776 }
 0x4b8   :  { %v1435_v58 = vmul.f32 0.5, %v1777_v3  ;;  %v1779_v5 = vpop.eup %1778 }
 0x4ba   :  { %v1436_v56 = vadd.f32 0.5, %v1435_v58 }
 0x4bc   :  { %v1442_v60 = vrot.slane %v1436_v56, 1  ;;  %v1445_v10 = vmul.f32 %v1779_v5, %v1436_v56  ;;  %v1448_v12 = vrot.slane %v1436_v56, 2 }
 0x4be   :  { %v1444_v9 = vmul.f32 %v1442_v60, %v1269_v57 }
 0x4c0   :  { %v2887_v11 = vadd.f32 %v1445_v10, %v1444_v9 }
 0x4c2   :  { %1780 = vtanh.f32 %v2887_v11 }
 0x4c8   :  { %v1781_v13 = vpop.eup %1780 }
 0x4c9   :  { %v1450_v14 = vmul.f32 %v1781_v13, %v1448_v12 }
 0x4cb   :  { %1451 = vst [vmem:[#allocation3 + $0x6] sm:$0x1] %v1450_v14  ;;  %1534 = vmatmul.f32.vlgmr.msrb.gmra.mxu0 %v1450_v14  ;;  %1554 = vmatmul.f32.vlgmr.msrb.gmra.mxu1 %v1450_v14 }
 0x4cc   :  { %1574 = vmatmul.f32.vlgmr.msra.gmra.mxu2 %v1450_v14  ;;  %1594 = vmatmul.f32.vlgmr.msra.gmra.mxu3 %v1450_v14 }
 0x548   :  { %v1555_v23 = vpop.f32.mrf.mxu1  ;;  %v1535_v32 = vpop.f32.mrf.mxu0 }
 0x549   :  { %v1602_v26 = vrot.slane %v1555_v23, 7 }
 0x54b   :  { %v1605_v34 = vsel %vm363_vm1, %v1535_v32, %v1602_v26 }
 0x54f   :  { %v1575_v27 = vpop.f32.mrf.mxu2  ;;  %v1595_v28 = vpop.f32.mrf.mxu3 }
 0x550   :  { %v1603_v30 = vrot.slane %v1575_v27, 6  ;;  %v1604_v31 = vrot.slane %v1595_v28, 5 }
 0x552   :  { %v1606_v35 = vsel %vm365_vm2, %v1603_v30, %v1604_v31 }
 0x553   :  { %v1607_v37 = vsel %vm367_vm3, %v1605_v34, %v1606_v35 }
 0x554   :  { %v1609_v40 = vadd.f32 %v1607_v37, %v1453_v36 }
 0x556   :  { %v1610_v42 = vmul.f32 0.5, %v1609_v40  ;;  %v1615_v44 = vrot.slane %v1609_v40, 3 }
 0x558   :  { %1782 = vtanh.f32 %v1610_v42 }
 0x559   :  { %1784 = vtanh.f32 %v1615_v44 }
 0x55e   :  { %v1783_v45 = vpop.eup %1782 }
 0x55f   :  { %v1612_v48 = vmul.f32 0.5, %v1783_v45  ;;  %v1785_v53 = vpop.eup %1784 }
 0x561   :  { %v1613_v49 = vadd.f32 0.5, %v1612_v48 }
 0x563   :  { %v1619_v52 = vrot.slane %v1613_v49, 1  ;;  %v1622_v50 = vmul.f32 %v1785_v53, %v1613_v49  ;;  %v1625_v59 = vrot.slane %v1613_v49, 2 }
 0x565   :  { %v1621_v57 = vmul.f32 %v1619_v52, %v2887_v11 }
 0x567   :  { %v1623_v51 = vadd.f32 %v1622_v50, %v1621_v57 }
 0x569   :  { %1786 = vtanh.f32 %v1623_v51  ;;  %1672 = vst [vmem:[#allocation16] sm:$0x1] %v1623_v51 }
 0x56f   :  { %v1787_v63 = vpop.eup %1786 }
 0x570   :  { %v1627_v0 = vmul.f32 %v1787_v63, %v1625_v59 }
 0x572   :  { %1628 = vst [vmem:[#allocation3 + $0x7] sm:$0x1] %v1627_v0 }
 0x573   :  { %1671 = vst [vmem:[#allocation14] sm:$0x1] %v1627_v0 }
 0x574   :  { %1694 = dma.vmem_to_hbm [thread:$0]  %s1690_s20, 16, %s1692_s23, [#allocation15]  }
 0x575   :  { %1705 = dma.vmem_to_hbm [thread:$0]  %s1701_s25, 16, %s1703_s27, [#allocation15]  }
 0x579   :  { %v1629_v47 = vld [vmem:[#allocation3] sm:$0xff] }
 0x57a   :  { %1666 = vmatmul.f32.vlgmr.msra.gmra.mxu0 %v1629_v47 }
 0x5f7   :  { %v1667_v4 = vpop.f32.mrf.mxu0 }
 0x5f8   :  { %v1668_v2 = vadd.f32 %v1739_v6, %v1667_v4 }
 0x5fa   :  { %1670 = vst [vmem:[#allocation13] sm:$0xff] %v1668_v2 }
 0x5fb   :  { %1683 = dma.vmem_to_hbm [thread:$0]  %s1679_s30, 128, %s1681_s12, [#allocation6]  }
 0x5fc   :  { %1986 = dma.done.wait [#allocation6], 128  }
 0x5fd   :  { %1987 = vsyncadd [#allocation6], 4294967168 }
 0x5fe   :  { %1988 = dma.done.wait [#allocation15], 32  }
 0x5ff   :  { %1989 = vsyncadd [#allocation15], 4294967264 }
 0x600   :  { %1718 = vsyncpa [#allocation5], 1 }
 0x601   :  { %1719 = vsyncpa [#allocation8], 1 }
 0x602   :  { %1720 = vsyncpa [#allocation11], 1 }
 0x603   :  { %1721 = vsyncpa [#allocation6], 1 }
 0x604   :  { %1722 = vsyncpa [#allocation15], 1 }

</bundles_post_ra>
